<compile_context>
chip_gen: v7x
topology: tpu7x:2x2x1
jax: 0.10.0
libtpu: 0.0.40
codegen_flags: <defaults>
</compile_context>

<pallas_src>
import jax
import jax.numpy as jnp
import numpy as np
from jax import lax
from jax.experimental import pallas as pl
from jax.experimental.pallas import tpu as pltpu


def _down_kernel(xa_ref, xb_ref, w1_ref, s1_ref, b1_ref, w2_ref, s2_ref, b2_ref,
                 o_ref, pad1_ref, pad2_ref):
    # xa_ref : (1, 2*TH, Wo, 2*Cin) bf16  main input rows of this row block (W-phases lane-grouped)
    # xb_ref : (1, 8,    Wo, 2*Cin) bf16  trailing 8 input rows (2-pooled-row bottom halo)
    # w1_ref : (3, 3, Cin, Cout) or (3, 3*Cin, Cout)   bf16 conv1 weights
    # s1/b1  : (1, Cout) f32   folded norm1 scale / bias (conv bias folded in)
    # w2_ref : (3, 3, Cout, Cout) or (3, 3*Cout, Cout) bf16 conv2 weights
    # s2/b2  : (1, Cout) f32   folded norm2 scale / bias
    # o_ref  : (1, TH*Wo, Cout)            lane-dense output slab for this row block
    # pad1   : (TH+4, Wo+2, Cin)  f32      pooled rows incl. 2-row conv1 halo, 1-col W halo
    # pad2   : (TH+2, Wo+2, Cout) f32      conv1 rows incl. 1-row conv2 halo, 1-col W halo
    f32 = jnp.float32
    bf16 = jnp.bfloat16
    TH = pad1_ref.shape[0] - 4
    Wo = pad1_ref.shape[1] - 2
    Cin = pad1_ref.shape[2]
    Cout = pad2_ref.shape[2]
    r = pl.program_id(1)
    last_r = pl.num_programs(1) - 1

    # ---- re-zero only the 1-px W-halo columns (interiors are fully rewritten) ----
    pad1_ref[:, 0:1, :] = jnp.zeros((TH + 4, 1, Cin), f32)
    pad1_ref[:, Wo + 1:Wo + 2, :] = jnp.zeros((TH + 4, 1, Cin), f32)
    pad2_ref[:, 0:1, :] = jnp.zeros((TH + 2, 1, Cout), f32)
    pad2_ref[:, Wo + 1:Wo + 2, :] = jnp.zeros((TH + 2, 1, Cout), f32)

    # ---- MaxPool2d(2), vectorized.  H-phase pool in bf16 (exact), W-phase on
    #      the lane-grouped halves in f32.  The H-row halo pooled from the
    #      wrapper's zero pre-pad is exactly conv1's zero padding. ----
    def pool2x2(x):                                   # (2*n, Wo, 2*Cin) bf16 -> (n, Wo, Cin) f32
        xr = x.reshape(x.shape[0] // 2, 2, Wo, 2 * Cin)
        hp = jnp.maximum(xr[:, 0], xr[:, 1]).astype(f32)
        return jnp.maximum(hp[:, :, :Cin], hp[:, :, Cin:])

    pad1_ref[0:TH, 1:Wo + 1, :] = pool2x2(xa_ref[0])            # pooled rows [r*TH-2, r*TH+TH-2)
    pad1_ref[TH:TH + 4, 1:Wo + 1, :] = pool2x2(xb_ref[0])       # pooled rows [r*TH+TH-2, r*TH+TH+2)

    # ---- 3x3 conv + folded-norm scale/bias + ReLU over a padded f32 buffer ----
    def conv3x3_relu(pad_ref, w_ref, s_ref, b_ref, rows_out, cin):
        m = rows_out * Wo
        acc = None
        if len(w_ref.shape) == 3:
            # dx-folded weights (3, 3*cin, Cout): K = 3*cin fills the 256-deep MXU.
            for dy in range(3):
                patch = jnp.concatenate(
                    [pad_ref[dy:dy + rows_out, dx:dx + Wo, :].reshape(m, cin).astype(bf16)
                     for dx in range(3)], axis=-1)
                d = jnp.dot(patch, w_ref[dy], preferred_element_type=f32)
                acc = d if acc is None else acc + d
        else:
            # per-tap weights (3, 3, cin, Cout): 9 whole-plane matmuls, one acc chain.
            for dy in range(3):
                for dx in range(3):
                    patch = pad_ref[dy:dy + rows_out, dx:dx + Wo, :].reshape(m, cin)
                    d = jnp.dot(patch.astype(bf16), w_ref[dy, dx],
                                preferred_element_type=f32)
                    acc = d if acc is None else acc + d
        return jnp.maximum(acc * s_ref[...] + b_ref[...], 0.0)   # (m, Cout) f32

    # conv1 + norm1 + ReLU over TH+2 rows (1-row halo for conv2) -> pad2 interior
    y1 = conv3x3_relu(pad1_ref, w1_ref, s1_ref, b1_ref, TH + 2, Cin)
    pad2_ref[:, 1:Wo + 1, :] = y1.reshape(TH + 2, Wo, Cout)

    # rows of pad2 that are conv2's zero padding (above row 0 / below row Ho-1)
    @pl.when(r == 0)
    def _():
        pad2_ref[0:1, :, :] = jnp.zeros((1, Wo + 2, Cout), f32)

    @pl.when(r == last_r)
    def _():
        pad2_ref[TH + 1:TH + 2, :, :] = jnp.zeros((1, Wo + 2, Cout), f32)

    # conv2 + norm2 + ReLU -> one lane-dense output slab store
    y2 = conv3x3_relu(pad2_ref, w2_ref, s2_ref, b2_ref, TH, Cout)
    o_ref[0] = y2.astype(o_ref.dtype)


def fold_bn(conv_bias, gamma, beta, mean, var, eps=1e-5):
    scale = gamma / jnp.sqrt(var + eps)
    bias = (conv_bias - mean) * scale + beta
    return scale, bias


def _vmem_estimate_bytes(th, wo, cin, cout, out_bytes):
    a_in = 2 * (2 * th) * wo * (2 * cin) * 2           # A input block, bf16, double-buffered
    b_in = 2 * 8 * wo * (2 * cin) * 2                  # B (halo) input block
    wgt = 2 * 9 * (cin + cout) * cout * 2              # conv weights, bf16, double-buffered
    outb = 2 * th * wo * cout * out_bytes              # output block, double-buffered
    pad1 = (th + 4) * (wo + 2) * cin * 4
    pad2 = (th + 2) * (wo + 2) * cout * 4
    accs = ((th + 2) + th) * wo * cout * 4             # f32 accumulators
    patches = 2 * (th + 2) * wo * max(cin, cout) * 4   # live patch temporaries (rough)
    return a_in + b_in + wgt + outb + pad1 + pad2 + accs + patches


def _select_row_block(ho, wo, cin, cout, out_bytes, budget_bytes=40 * 1024 * 1024):
    # Largest row tile (multiple of 4 dividing Ho) that fits the VMEM budget;
    # bigger tiles amortize the 8-row halo re-read and the per-step overhead.
    cands = [t for t in range(4, ho + 1, 4) if ho % t == 0]
    if not cands:
        raise ValueError("row-tiled Down kernel needs (H // 2) % 4 == 0")
    th = cands[0]
    for t in cands:
        if _vmem_estimate_bytes(t, wo, cin, cout, out_bytes) <= budget_bytes:
            th = t
    return th


def down_forward_nhwc(x_nhwc, w1, s1, b1, w2, s2, b2, *, row_block=None,
                      out_dtype=jnp.bfloat16):
    """Down.forward, NHWC in -> NHWC out.  Preferred entry point for chaining
    Down blocks (bf16 output by default: the next block re-quantizes anyway)."""
    N, H, W, Cin = x_nhwc.shape
    Cout = w1.shape[-1]
    assert H % 2 == 0 and W % 2 == 0, "MaxPool2d(2) path assumes even H, W"
    Ho, Wo = H // 2, W // 2

    out_bytes = jnp.dtype(out_dtype).itemsize
    if row_block is None:
        TH = _select_row_block(Ho, Wo, Cin, Cout, out_bytes)
    else:
        TH = row_block
        assert Ho % TH == 0 and TH % 4 == 0, "row_block must divide Ho and be a multiple of 4"
    R = Ho // TH

    # Free view reshape: group the two W-phases of the 2x2 pool onto the lane dim,
    # then zero pre-pad 4 input rows top/bottom (= the 2-pooled-row conv halo) so
    # every row block reads a fixed-size, always-in-range window.
    xg = x_nhwc.astype(jnp.bfloat16).reshape(N, H, Wo, 2 * Cin)
    xp = jnp.pad(xg, ((0, 0), (4, 4), (0, 0), (0, 0)))

    fold1 = (Cin % 128 == 0)
    fold2 = (Cout % 128 == 0)
    w1b = w1.astype(jnp.bfloat16)
    w2b = w2.astype(jnp.bfloat16)
    if fold1:
        w1b = w1b.reshape(3, 3 * Cin, Cout)     # (dy, dx*Cin+cin, cout)
    if fold2:
        w2b = w2b.reshape(3, 3 * Cout, Cout)
    s1r = s1.reshape(1, Cout).astype(jnp.float32)
    b1r = b1.reshape(1, Cout).astype(jnp.float32)
    s2r = s2.reshape(1, Cout).astype(jnp.float32)
    b2r = b2.reshape(1, Cout).astype(jnp.float32)

    w1_spec = (pl.BlockSpec((3, 3 * Cin, Cout), lambda b, r: (0, 0, 0)) if fold1
               else pl.BlockSpec((3, 3, Cin, Cout), lambda b, r: (0, 0, 0, 0)))
    w2_spec = (pl.BlockSpec((3, 3 * Cout, Cout), lambda b, r: (0, 0, 0)) if fold2
               else pl.BlockSpec((3, 3, Cout, Cout), lambda b, r: (0, 0, 0, 0)))

    grid_spec = pltpu.PrefetchScalarGridSpec(
        num_scalar_prefetch=0,
        grid=(N, R),
        in_specs=[
            # main 2*TH input rows of this row block
            pl.BlockSpec((1, 2 * TH, Wo, 2 * Cin), lambda b, r: (b, r, 0, 0)),
            # trailing 8 input rows (bottom halo of this block / overlap with next)
            pl.BlockSpec((1, 8, Wo, 2 * Cin),
                         lambda b, r: (b, (r + 1) * (TH // 4), 0, 0)),
            w1_spec,
            pl.BlockSpec((1, Cout), lambda b, r: (0, 0)),
            pl.BlockSpec((1, Cout), lambda b, r: (0, 0)),
            w2_spec,
            pl.BlockSpec((1, Cout), lambda b, r: (0, 0)),
            pl.BlockSpec((1, Cout), lambda b, r: (0, 0)),
        ],
        out_specs=pl.BlockSpec((1, TH * Wo, Cout), lambda b, r: (b, r, 0)),
        scratch_shapes=[
            pltpu.VMEM((TH + 4, Wo + 2, Cin), jnp.float32),
            pltpu.VMEM((TH + 2, Wo + 2, Cout), jnp.float32),
        ],
    )

    est = _vmem_estimate_bytes(TH, Wo, Cin, Cout, out_bytes)
    vmem_limit = int(min(100 * 1024 * 1024, max(32 * 1024 * 1024, 2 * est)))

    out2d = pl.pallas_call(
        _down_kernel,
        out_shape=jax.ShapeDtypeStruct((N, Ho * Wo, Cout), out_dtype),
        grid_spec=grid_spec,
        compiler_params=pltpu.CompilerParams(
            dimension_semantics=("parallel", "parallel"),
            vmem_limit_bytes=vmem_limit,
        ),
    )(xp, xp, w1b, s1r, b1r, w2b, s2r, b2r)
    return out2d.reshape(N, Ho, Wo, Cout)


def down_forward(x_nchw, w1, s1, b1, w2, s2, b2, *, row_block=None,
                 out_dtype=jnp.float32):
    """PyTorch-compatible NCHW shim around the NHWC kernel (f32 output for parity).
    Use down_forward_nhwc directly when composing blocks to skip the transposes."""
    x_nhwc = jnp.transpose(x_nchw, (0, 2, 3, 1))
    out_nhwc = down_forward_nhwc(x_nhwc, w1, s1, b1, w2, s2, b2,
                                 row_block=row_block, out_dtype=out_dtype)
    return jnp.transpose(out_nhwc, (0, 3, 1, 2))


if __name__ == "__main__":
    N, Cin, Cout, H, W = 2, 4, 8, 16, 16
    key = jax.random.PRNGKey(0)
    ks = jax.random.split(key, 13)

    x = jax.random.normal(ks[0], (N, Cin, H, W), jnp.float32)

    # conv1 + norm1 parameters (deterministic synthetic init)
    w1 = 0.2 * jax.random.normal(ks[1], (3, 3, Cin, Cout), jnp.float32)
    cb1 = 0.1 * jax.random.normal(ks[2], (Cout,), jnp.float32)
    g1 = 1.0 + 0.1 * jax.random.normal(ks[3], (Cout,), jnp.float32)
    be1 = 0.1 * jax.random.normal(ks[4], (Cout,), jnp.float32)
    m1 = 0.1 * jax.random.normal(ks[5], (Cout,), jnp.float32)
    v1 = 1.0 + 0.1 * jax.random.uniform(ks[6], (Cout,), jnp.float32)

    # conv2 + norm2 parameters
    w2 = 0.2 * jax.random.normal(ks[7], (3, 3, Cout, Cout), jnp.float32)
    cb2 = 0.1 * jax.random.normal(ks[8], (Cout,), jnp.float32)
    g2 = 1.0 + 0.1 * jax.random.normal(ks[9], (Cout,), jnp.float32)
    be2 = 0.1 * jax.random.normal(ks[10], (Cout,), jnp.float32)
    m2 = 0.1 * jax.random.normal(ks[11], (Cout,), jnp.float32)
    v2 = 1.0 + 0.1 * jax.random.uniform(ks[12], (Cout,), jnp.float32)

    s1, b1 = fold_bn(cb1, g1, be1, m1, v1)
    s2, b2 = fold_bn(cb2, g2, be2, m2, v2)

    # pure-JAX reference (mirrors the kernel's bf16 quantization of MXU operands)
    f32 = jnp.float32
    xq = x.astype(jnp.bfloat16).astype(f32)
    w1q = w1.astype(jnp.bfloat16).astype(f32)
    w2q = w2.astype(jnp.bfloat16).astype(f32)
    xh = jnp.transpose(xq, (0, 2, 3, 1))
    pooled = lax.reduce_window(xh, -jnp.inf, lax.max,
                               (1, 2, 2, 1), (1, 2, 2, 1), "VALID")
    c1 = lax.conv_general_dilated(pooled, w1q, (1, 1), "SAME",
                                  dimension_numbers=("NHWC", "HWIO", "NHWC"),
                                  precision=lax.Precision.HIGHEST)
    r1 = jnp.maximum(c1 * s1 + b1, 0.0)
    r1q = r1.astype(jnp.bfloat16).astype(f32)
    c2 = lax.conv_general_dilated(r1q, w2q, (1, 1), "SAME",
                                  dimension_numbers=("NHWC", "HWIO", "NHWC"),
                                  precision=lax.Precision.HIGHEST)
    ref = jnp.transpose(jnp.maximum(c2 * s2 + b2, 0.0), (0, 3, 1, 2))

    # 1) NCHW shim, auto row tile (whole image per step here), f32 output
    out1 = jax.block_until_ready(down_forward(x, w1, s1, b1, w2, s2, b2))
    assert out1.shape == (N, Cout, H // 2, W // 2)
    np.testing.assert_allclose(np.asarray(out1), np.asarray(ref),
                               rtol=2e-2, atol=2e-2)

    # 2) NHWC chaining entry, explicit row tiling (2 row blocks), bf16 output
    x_nhwc = jnp.transpose(x, (0, 2, 3, 1))
    out2 = jax.block_until_ready(
        down_forward_nhwc(x_nhwc, w1, s1, b1, w2, s2, b2,
                          row_block=4, out_dtype=jnp.bfloat16))
    out2_nchw = jnp.transpose(out2.astype(jnp.float32), (0, 3, 1, 2))
    np.testing.assert_allclose(np.asarray(out2_nchw), np.asarray(ref),
                               rtol=2e-2, atol=3e-2)

    print("KERNEL_OK")
</pallas_src>

<mosaic_0001>
module attributes {stable_mosaic.version = 11 : i64} {
  func.func @_down_kernel(%arg0: i32, %arg1: i32, %arg2: memref<1x16x8x8xbf16, #tpu.memory_space<vmem>>, %arg3: memref<1x8x8x8xbf16, #tpu.memory_space<vmem>>, %arg4: memref<3x3x4x8xbf16, #tpu.memory_space<vmem>>, %arg5: memref<1x8xf32, #tpu.memory_space<vmem>>, %arg6: memref<1x8xf32, #tpu.memory_space<vmem>>, %arg7: memref<3x3x8x8xbf16, #tpu.memory_space<vmem>>, %arg8: memref<1x8xf32, #tpu.memory_space<vmem>>, %arg9: memref<1x8xf32, #tpu.memory_space<vmem>>, %arg10: memref<1x64x8xf32, #tpu.memory_space<vmem>>, %arg11: memref<12x10x4xf32, #tpu.memory_space<vmem>>, %arg12: memref<10x10x8xf32, #tpu.memory_space<vmem>>) attributes {dimension_semantics = [#tpu.dimension_semantics<parallel>, #tpu.dimension_semantics<parallel>], iteration_bounds = array<i64: 2, 1>, scalar_prefetch = 0 : i64, scratch_operands = 2 : i64, tpu.core_type = #tpu.core_type<tc>, window_params = [{transform_indices = @transform_0, window_bounds = array<i64: 1, 16, 8, 8>}, {transform_indices = @transform_1, window_bounds = array<i64: 1, 8, 8, 8>}, {pipeline_mode = #tpu.pipeline_mode<synchronous>, transform_indices = @transform_2, window_bounds = array<i64: 3, 3, 4, 8>}, {pipeline_mode = #tpu.pipeline_mode<synchronous>, transform_indices = @transform_3, window_bounds = array<i64: 1, 8>}, {pipeline_mode = #tpu.pipeline_mode<synchronous>, transform_indices = @transform_4, window_bounds = array<i64: 1, 8>}, {pipeline_mode = #tpu.pipeline_mode<synchronous>, transform_indices = @transform_5, window_bounds = array<i64: 3, 3, 8, 8>}, {pipeline_mode = #tpu.pipeline_mode<synchronous>, transform_indices = @transform_6, window_bounds = array<i64: 1, 8>}, {pipeline_mode = #tpu.pipeline_mode<synchronous>, transform_indices = @transform_7, window_bounds = array<i64: 1, 8>}, {transform_indices = @transform_8, window_bounds = array<i64: 1, 64, 8>}]} {
    %cst = arith.constant 0.000000e+00 : f32
    %0 = vector.broadcast %cst : f32 to vector<12x1x4xf32>
    %c0 = arith.constant 0 : index
    %c0_0 = arith.constant 0 : index
    %c0_1 = arith.constant 0 : index
    %1 = vector.load %arg11[%c0, %c0_0, %c0_1] : memref<12x10x4xf32, #tpu.memory_space<vmem>>, vector<12x1x4xf32>
    tpu.vector_store %arg11[%c0, %c0_0, %c0_1], %0 {strides = array<i32>} : memref<12x10x4xf32, #tpu.memory_space<vmem>>, vector<12x1x4xf32>,
    %cst_2 = arith.constant 0.000000e+00 : f32
    %2 = vector.broadcast %cst_2 : f32 to vector<12x1x4xf32>
    %c0_3 = arith.constant 0 : index
    %c9 = arith.constant 9 : index
    %c0_4 = arith.constant 0 : index
    %3 = vector.load %arg11[%c0_3, %c9, %c0_4] : memref<12x10x4xf32, #tpu.memory_space<vmem>>, vector<12x1x4xf32>
    tpu.vector_store %arg11[%c0_3, %c9, %c0_4], %2 {strides = array<i32>} : memref<12x10x4xf32, #tpu.memory_space<vmem>>, vector<12x1x4xf32>,
    %cst_5 = arith.constant 0.000000e+00 : f32
    %4 = vector.broadcast %cst_5 : f32 to vector<10x1x8xf32>
    %c0_6 = arith.constant 0 : index
    %c0_7 = arith.constant 0 : index
    %c0_8 = arith.constant 0 : index
    %5 = vector.load %arg12[%c0_6, %c0_7, %c0_8] : memref<10x10x8xf32, #tpu.memory_space<vmem>>, vector<10x1x8xf32>
    tpu.vector_store %arg12[%c0_6, %c0_7, %c0_8], %4 {strides = array<i32>} : memref<10x10x8xf32, #tpu.memory_space<vmem>>, vector<10x1x8xf32>,
    %cst_9 = arith.constant 0.000000e+00 : f32
    %6 = vector.broadcast %cst_9 : f32 to vector<10x1x8xf32>
    %c0_10 = arith.constant 0 : index
    %c9_11 = arith.constant 9 : index
    %c0_12 = arith.constant 0 : index
    %7 = vector.load %arg12[%c0_10, %c9_11, %c0_12] : memref<10x10x8xf32, #tpu.memory_space<vmem>>, vector<10x1x8xf32>
    tpu.vector_store %arg12[%c0_10, %c9_11, %c0_12], %6 {strides = array<i32>} : memref<10x10x8xf32, #tpu.memory_space<vmem>>, vector<10x1x8xf32>,
    %c0_13 = arith.constant 0 : index
    %c0_14 = arith.constant 0 : index
    %c0_15 = arith.constant 0 : index
    %c0_16 = arith.constant 0 : index
    %8 = vector.load %arg2[%c0_13, %c0_14, %c0_15, %c0_16] : memref<1x16x8x8xbf16, #tpu.memory_space<vmem>>, vector<1x16x8x8xbf16>
    %9 = vector.shape_cast %8 : vector<1x16x8x8xbf16> to vector<16x8x8xbf16>
    %10 = vector.shape_cast %9 : vector<16x8x8xbf16> to vector<8x2x8x8xbf16>
    %11 = vector.extract_strided_slice %10 {offsets = [0, 0, 0, 0], sizes = [8, 1, 8, 8], strides = [1, 1, 1, 1]} : vector<8x2x8x8xbf16> to vector<8x1x8x8xbf16>
    %12 = vector.shape_cast %11 : vector<8x1x8x8xbf16> to vector<8x8x8xbf16>
    %13 = vector.extract_strided_slice %10 {offsets = [0, 1, 0, 0], sizes = [8, 1, 8, 8], strides = [1, 1, 1, 1]} : vector<8x2x8x8xbf16> to vector<8x1x8x8xbf16>
    %14 = vector.shape_cast %13 : vector<8x1x8x8xbf16> to vector<8x8x8xbf16>
    %15 = arith.maximumf %12, %14 : vector<8x8x8xbf16>
    %16 = arith.extf %15 : vector<8x8x8xbf16> to vector<8x8x8xf32>
    %17 = vector.extract_strided_slice %16 {offsets = [0, 0, 0], sizes = [8, 8, 4], strides = [1, 1, 1]} : vector<8x8x8xf32> to vector<8x8x4xf32>
    %18 = vector.extract_strided_slice %16 {offsets = [0, 0, 4], sizes = [8, 8, 4], strides = [1, 1, 1]} : vector<8x8x8xf32> to vector<8x8x4xf32>
    %19 = arith.maximumf %17, %18 : vector<8x8x4xf32>
    %c0_17 = arith.constant 0 : index
    %c1 = arith.constant 1 : index
    %c0_18 = arith.constant 0 : index
    %20 = vector.load %arg11[%c0_17, %c1, %c0_18] : memref<12x10x4xf32, #tpu.memory_space<vmem>>, vector<8x8x4xf32>
    tpu.vector_store %arg11[%c0_17, %c1, %c0_18], %19 {strides = array<i32>} : memref<12x10x4xf32, #tpu.memory_space<vmem>>, vector<8x8x4xf32>,
    %c0_19 = arith.constant 0 : index
    %c0_20 = arith.constant 0 : index
    %c0_21 = arith.constant 0 : index
    %c0_22 = arith.constant 0 : index
    %21 = vector.load %arg3[%c0_19, %c0_20, %c0_21, %c0_22] : memref<1x8x8x8xbf16, #tpu.memory_space<vmem>>, vector<1x8x8x8xbf16>
    %22 = vector.shape_cast %21 : vector<1x8x8x8xbf16> to vector<8x8x8xbf16>
    %23 = vector.shape_cast %22 : vector<8x8x8xbf16> to vector<4x2x8x8xbf16>
    %24 = vector.extract_strided_slice %23 {offsets = [0, 0, 0, 0], sizes = [4, 1, 8, 8], strides = [1, 1, 1, 1]} : vector<4x2x8x8xbf16> to vector<4x1x8x8xbf16>
    %25 = vector.shape_cast %24 : vector<4x1x8x8xbf16> to vector<4x8x8xbf16>
    %26 = vector.extract_strided_slice %23 {offsets = [0, 1, 0, 0], sizes = [4, 1, 8, 8], strides = [1, 1, 1, 1]} : vector<4x2x8x8xbf16> to vector<4x1x8x8xbf16>
    %27 = vector.shape_cast %26 : vector<4x1x8x8xbf16> to vector<4x8x8xbf16>
    %28 = arith.maximumf %25, %27 : vector<4x8x8xbf16>
    %29 = arith.extf %28 : vector<4x8x8xbf16> to vector<4x8x8xf32>
    %30 = vector.extract_strided_slice %29 {offsets = [0, 0, 0], sizes = [4, 8, 4], strides = [1, 1, 1]} : vector<4x8x8xf32> to vector<4x8x4xf32>
    %31 = vector.extract_strided_slice %29 {offsets = [0, 0, 4], sizes = [4, 8, 4], strides = [1, 1, 1]} : vector<4x8x8xf32> to vector<4x8x4xf32>
    %32 = arith.maximumf %30, %31 : vector<4x8x4xf32>
    %c8 = arith.constant 8 : index
    %c1_23 = arith.constant 1 : index
    %c0_24 = arith.constant 0 : index
    %33 = vector.load %arg11[%c8, %c1_23, %c0_24] : memref<12x10x4xf32, #tpu.memory_space<vmem>>, vector<4x8x4xf32>
    tpu.vector_store %arg11[%c8, %c1_23, %c0_24], %32 {strides = array<i32>} : memref<12x10x4xf32, #tpu.memory_space<vmem>>, vector<4x8x4xf32>,
    %c0_25 = arith.constant 0 : index
    %c0_26 = arith.constant 0 : index
    %c0_27 = arith.constant 0 : index
    %34 = vector.load %arg11[%c0_25, %c0_26, %c0_27] : memref<12x10x4xf32, #tpu.memory_space<vmem>>, vector<10x8x4xf32>
    %35 = vector.shape_cast %34 : vector<10x8x4xf32> to vector<80x4xf32>
    %36 = arith.truncf %35 : vector<80x4xf32> to vector<80x4xbf16>
    %c0_28 = arith.constant 0 : index
    %c0_29 = arith.constant 0 : index
    %c0_30 = arith.constant 0 : index
    %c0_31 = arith.constant 0 : index
    %37 = vector.load %arg4[%c0_28, %c0_29, %c0_30, %c0_31] : memref<3x3x4x8xbf16, #tpu.memory_space<vmem>>, vector<1x1x4x8xbf16>
    %38 = vector.shape_cast %37 : vector<1x1x4x8xbf16> to vector<4x8xbf16>
    %cst_32 = arith.constant dense<0.000000e+00> : vector<80x8xf32>
    %39 = tpu.matmul %36, %38, %cst_32 {dimension_numbers = #tpu.dot_dimension_numbers<[1], [0], [0], [1], [0, 0, 1, 1], [], []>} : vector<80x4xbf16>, vector<4x8xbf16>, vector<80x8xf32> -> vector<80x8xf32>
    %c0_33 = arith.constant 0 : index
    %c1_34 = arith.constant 1 : index
    %c0_35 = arith.constant 0 : index
    %40 = vector.load %arg11[%c0_33, %c1_34, %c0_35] : memref<12x10x4xf32, #tpu.memory_space<vmem>>, vector<10x8x4xf32>
    %41 = vector.shape_cast %40 : vector<10x8x4xf32> to vector<80x4xf32>
    %42 = arith.truncf %41 : vector<80x4xf32> to vector<80x4xbf16>
    %c0_36 = arith.constant 0 : index
    %c1_37 = arith.constant 1 : index
    %c0_38 = arith.constant 0 : index
    %c0_39 = arith.constant 0 : index
    %43 = vector.load %arg4[%c0_36, %c1_37, %c0_38, %c0_39] : memref<3x3x4x8xbf16, #tpu.memory_space<vmem>>, vector<1x1x4x8xbf16>
    %44 = vector.shape_cast %43 : vector<1x1x4x8xbf16> to vector<4x8xbf16>
    %cst_40 = arith.constant dense<0.000000e+00> : vector<80x8xf32>
    %45 = tpu.matmul %42, %44, %cst_40 {dimension_numbers = #tpu.dot_dimension_numbers<[1], [0], [0], [1], [0, 0, 1, 1], [], []>} : vector<80x4xbf16>, vector<4x8xbf16>, vector<80x8xf32> -> vector<80x8xf32>
    %46 = arith.addf %39, %45 : vector<80x8xf32>
    %c0_41 = arith.constant 0 : index
    %c2 = arith.constant 2 : index
    %c0_42 = arith.constant 0 : index
    %47 = vector.load %arg11[%c0_41, %c2, %c0_42] : memref<12x10x4xf32, #tpu.memory_space<vmem>>, vector<10x8x4xf32>
    %48 = vector.shape_cast %47 : vector<10x8x4xf32> to vector<80x4xf32>
    %49 = arith.truncf %48 : vector<80x4xf32> to vector<80x4xbf16>
    %c0_43 = arith.constant 0 : index
    %c2_44 = arith.constant 2 : index
    %c0_45 = arith.constant 0 : index
    %c0_46 = arith.constant 0 : index
    %50 = vector.load %arg4[%c0_43, %c2_44, %c0_45, %c0_46] : memref<3x3x4x8xbf16, #tpu.memory_space<vmem>>, vector<1x1x4x8xbf16>
    %51 = vector.shape_cast %50 : vector<1x1x4x8xbf16> to vector<4x8xbf16>
    %cst_47 = arith.constant dense<0.000000e+00> : vector<80x8xf32>
    %52 = tpu.matmul %49, %51, %cst_47 {dimension_numbers = #tpu.dot_dimension_numbers<[1], [0], [0], [1], [0, 0, 1, 1], [], []>} : vector<80x4xbf16>, vector<4x8xbf16>, vector<80x8xf32> -> vector<80x8xf32>
    %53 = arith.addf %46, %52 : vector<80x8xf32>
    %c1_48 = arith.constant 1 : index
    %c0_49 = arith.constant 0 : index
    %c0_50 = arith.constant 0 : index
    %54 = vector.load %arg11[%c1_48, %c0_49, %c0_50] : memref<12x10x4xf32, #tpu.memory_space<vmem>>, vector<10x8x4xf32>
    %55 = vector.shape_cast %54 : vector<10x8x4xf32> to vector<80x4xf32>
    %56 = arith.truncf %55 : vector<80x4xf32> to vector<80x4xbf16>
    %c1_51 = arith.constant 1 : index
    %c0_52 = arith.constant 0 : index
    %c0_53 = arith.constant 0 : index
    %c0_54 = arith.constant 0 : index
    %57 = vector.load %arg4[%c1_51, %c0_52, %c0_53, %c0_54] : memref<3x3x4x8xbf16, #tpu.memory_space<vmem>>, vector<1x1x4x8xbf16>
    %58 = vector.shape_cast %57 : vector<1x1x4x8xbf16> to vector<4x8xbf16>
    %cst_55 = arith.constant dense<0.000000e+00> : vector<80x8xf32>
    %59 = tpu.matmul %56, %58, %cst_55 {dimension_numbers = #tpu.dot_dimension_numbers<[1], [0], [0], [1], [0, 0, 1, 1], [], []>} : vector<80x4xbf16>, vector<4x8xbf16>, vector<80x8xf32> -> vector<80x8xf32>
    %60 = arith.addf %53, %59 : vector<80x8xf32>
    %c1_56 = arith.constant 1 : index
    %c1_57 = arith.constant 1 : index
    %c0_58 = arith.constant 0 : index
    %61 = vector.load %arg11[%c1_56, %c1_57, %c0_58] : memref<12x10x4xf32, #tpu.memory_space<vmem>>, vector<10x8x4xf32>
    %62 = vector.shape_cast %61 : vector<10x8x4xf32> to vector<80x4xf32>
    %63 = arith.truncf %62 : vector<80x4xf32> to vector<80x4xbf16>
    %c1_59 = arith.constant 1 : index
    %c1_60 = arith.constant 1 : index
    %c0_61 = arith.constant 0 : index
    %c0_62 = arith.constant 0 : index
    %64 = vector.load %arg4[%c1_59, %c1_60, %c0_61, %c0_62] : memref<3x3x4x8xbf16, #tpu.memory_space<vmem>>, vector<1x1x4x8xbf16>
    %65 = vector.shape_cast %64 : vector<1x1x4x8xbf16> to vector<4x8xbf16>
    %cst_63 = arith.constant dense<0.000000e+00> : vector<80x8xf32>
    %66 = tpu.matmul %63, %65, %cst_63 {dimension_numbers = #tpu.dot_dimension_numbers<[1], [0], [0], [1], [0, 0, 1, 1], [], []>} : vector<80x4xbf16>, vector<4x8xbf16>, vector<80x8xf32> -> vector<80x8xf32>
    %67 = arith.addf %60, %66 : vector<80x8xf32>
    %c1_64 = arith.constant 1 : index
    %c2_65 = arith.constant 2 : index
    %c0_66 = arith.constant 0 : index
    %68 = vector.load %arg11[%c1_64, %c2_65, %c0_66] : memref<12x10x4xf32, #tpu.memory_space<vmem>>, vector<10x8x4xf32>
    %69 = vector.shape_cast %68 : vector<10x8x4xf32> to vector<80x4xf32>
    %70 = arith.truncf %69 : vector<80x4xf32> to vector<80x4xbf16>
    %c1_67 = arith.constant 1 : index
    %c2_68 = arith.constant 2 : index
    %c0_69 = arith.constant 0 : index
    %c0_70 = arith.constant 0 : index
    %71 = vector.load %arg4[%c1_67, %c2_68, %c0_69, %c0_70] : memref<3x3x4x8xbf16, #tpu.memory_space<vmem>>, vector<1x1x4x8xbf16>
    %72 = vector.shape_cast %71 : vector<1x1x4x8xbf16> to vector<4x8xbf16>
    %cst_71 = arith.constant dense<0.000000e+00> : vector<80x8xf32>
    %73 = tpu.matmul %70, %72, %cst_71 {dimension_numbers = #tpu.dot_dimension_numbers<[1], [0], [0], [1], [0, 0, 1, 1], [], []>} : vector<80x4xbf16>, vector<4x8xbf16>, vector<80x8xf32> -> vector<80x8xf32>
    %74 = arith.addf %67, %73 : vector<80x8xf32>
    %c2_72 = arith.constant 2 : index
    %c0_73 = arith.constant 0 : index
    %c0_74 = arith.constant 0 : index
    %75 = vector.load %arg11[%c2_72, %c0_73, %c0_74] : memref<12x10x4xf32, #tpu.memory_space<vmem>>, vector<10x8x4xf32>
    %76 = vector.shape_cast %75 : vector<10x8x4xf32> to vector<80x4xf32>
    %77 = arith.truncf %76 : vector<80x4xf32> to vector<80x4xbf16>
    %c2_75 = arith.constant 2 : index
    %c0_76 = arith.constant 0 : index
    %c0_77 = arith.constant 0 : index
    %c0_78 = arith.constant 0 : index
    %78 = vector.load %arg4[%c2_75, %c0_76, %c0_77, %c0_78] : memref<3x3x4x8xbf16, #tpu.memory_space<vmem>>, vector<1x1x4x8xbf16>
    %79 = vector.shape_cast %78 : vector<1x1x4x8xbf16> to vector<4x8xbf16>
    %cst_79 = arith.constant dense<0.000000e+00> : vector<80x8xf32>
    %80 = tpu.matmul %77, %79, %cst_79 {dimension_numbers = #tpu.dot_dimension_numbers<[1], [0], [0], [1], [0, 0, 1, 1], [], []>} : vector<80x4xbf16>, vector<4x8xbf16>, vector<80x8xf32> -> vector<80x8xf32>
    %81 = arith.addf %74, %80 : vector<80x8xf32>
    %c2_80 = arith.constant 2 : index
    %c1_81 = arith.constant 1 : index
    %c0_82 = arith.constant 0 : index
    %82 = vector.load %arg11[%c2_80, %c1_81, %c0_82] : memref<12x10x4xf32, #tpu.memory_space<vmem>>, vector<10x8x4xf32>
    %83 = vector.shape_cast %82 : vector<10x8x4xf32> to vector<80x4xf32>
    %84 = arith.truncf %83 : vector<80x4xf32> to vector<80x4xbf16>
    %c2_83 = arith.constant 2 : index
    %c1_84 = arith.constant 1 : index
    %c0_85 = arith.constant 0 : index
    %c0_86 = arith.constant 0 : index
    %85 = vector.load %arg4[%c2_83, %c1_84, %c0_85, %c0_86] : memref<3x3x4x8xbf16, #tpu.memory_space<vmem>>, vector<1x1x4x8xbf16>
    %86 = vector.shape_cast %85 : vector<1x1x4x8xbf16> to vector<4x8xbf16>
    %cst_87 = arith.constant dense<0.000000e+00> : vector<80x8xf32>
    %87 = tpu.matmul %84, %86, %cst_87 {dimension_numbers = #tpu.dot_dimension_numbers<[1], [0], [0], [1], [0, 0, 1, 1], [], []>} : vector<80x4xbf16>, vector<4x8xbf16>, vector<80x8xf32> -> vector<80x8xf32>
    %88 = arith.addf %81, %87 : vector<80x8xf32>
    %c2_88 = arith.constant 2 : index
    %c2_89 = arith.constant 2 : index
    %c0_90 = arith.constant 0 : index
    %89 = vector.load %arg11[%c2_88, %c2_89, %c0_90] : memref<12x10x4xf32, #tpu.memory_space<vmem>>, vector<10x8x4xf32>
    %90 = vector.shape_cast %89 : vector<10x8x4xf32> to vector<80x4xf32>
    %91 = arith.truncf %90 : vector<80x4xf32> to vector<80x4xbf16>
    %c2_91 = arith.constant 2 : index
    %c2_92 = arith.constant 2 : index
    %c0_93 = arith.constant 0 : index
    %c0_94 = arith.constant 0 : index
    %92 = vector.load %arg4[%c2_91, %c2_92, %c0_93, %c0_94] : memref<3x3x4x8xbf16, #tpu.memory_space<vmem>>, vector<1x1x4x8xbf16>
    %93 = vector.shape_cast %92 : vector<1x1x4x8xbf16> to vector<4x8xbf16>
    %cst_95 = arith.constant dense<0.000000e+00> : vector<80x8xf32>
    %94 = tpu.matmul %91, %93, %cst_95 {dimension_numbers = #tpu.dot_dimension_numbers<[1], [0], [0], [1], [0, 0, 1, 1], [], []>} : vector<80x4xbf16>, vector<4x8xbf16>, vector<80x8xf32> -> vector<80x8xf32>
    %95 = arith.addf %88, %94 : vector<80x8xf32>
    %c0_96 = arith.constant 0 : index
    %c0_97 = arith.constant 0 : index
    %96 = vector.load %arg5[%c0_96, %c0_97] : memref<1x8xf32, #tpu.memory_space<vmem>>, vector<1x8xf32>
    %97 = vector.broadcast %96 : vector<1x8xf32> to vector<80x8xf32>
    %98 = arith.mulf %95, %97 : vector<80x8xf32>
    %c0_98 = arith.constant 0 : index
    %c0_99 = arith.constant 0 : index
    %99 = vector.load %arg6[%c0_98, %c0_99] : memref<1x8xf32, #tpu.memory_space<vmem>>, vector<1x8xf32>
    %100 = vector.broadcast %99 : vector<1x8xf32> to vector<80x8xf32>
    %101 = arith.addf %98, %100 : vector<80x8xf32>
    %cst_100 = arith.constant 0.000000e+00 : f32
    %102 = vector.broadcast %cst_100 : f32 to vector<80x8xf32>
    %103 = arith.maximumf %101, %102 : vector<80x8xf32>
    %104 = vector.shape_cast %103 : vector<80x8xf32> to vector<10x8x8xf32>
    %c0_101 = arith.constant 0 : index
    %c1_102 = arith.constant 1 : index
    %c0_103 = arith.constant 0 : index
    %105 = vector.load %arg12[%c0_101, %c1_102, %c0_103] : memref<10x10x8xf32, #tpu.memory_space<vmem>>, vector<10x8x8xf32>
    tpu.vector_store %arg12[%c0_101, %c1_102, %c0_103], %104 {strides = array<i32>} : memref<10x10x8xf32, #tpu.memory_space<vmem>>, vector<10x8x8xf32>,
    %c0_i32 = arith.constant 0 : i32
    %106 = arith.cmpi eq, %arg1, %c0_i32 : i32
    %107 = arith.extui %106 : i1 to i32
    %c0_i32_104 = arith.constant 0 : i32
    %108 = arith.cmpi ne, %107, %c0_i32_104 : i32
    scf.if %108 {
      %cst_187 = arith.constant 0.000000e+00 : f32
      %185 = vector.broadcast %cst_187 : f32 to vector<1x10x8xf32>
      %c0_188 = arith.constant 0 : index
      %c0_189 = arith.constant 0 : index
      %c0_190 = arith.constant 0 : index
      %186 = vector.load %arg12[%c0_188, %c0_189, %c0_190] : memref<10x10x8xf32, #tpu.memory_space<vmem>>, vector<1x10x8xf32>
      tpu.vector_store %arg12[%c0_188, %c0_189, %c0_190], %185 {strides = array<i32>} : memref<10x10x8xf32, #tpu.memory_space<vmem>>, vector<1x10x8xf32>,
    } else {
    }
    %c0_i32_105 = arith.constant 0 : i32
    %109 = arith.cmpi eq, %arg1, %c0_i32_105 : i32
    %110 = arith.extui %109 : i1 to i32
    %c0_i32_106 = arith.constant 0 : i32
    %111 = arith.cmpi ne, %110, %c0_i32_106 : i32
    scf.if %111 {
      %cst_187 = arith.constant 0.000000e+00 : f32
      %185 = vector.broadcast %cst_187 : f32 to vector<1x10x8xf32>
      %c9_188 = arith.constant 9 : index
      %c0_189 = arith.constant 0 : index
      %c0_190 = arith.constant 0 : index
      %186 = vector.load %arg12[%c9_188, %c0_189, %c0_190] : memref<10x10x8xf32, #tpu.memory_space<vmem>>, vector<1x10x8xf32>
      tpu.vector_store %arg12[%c9_188, %c0_189, %c0_190], %185 {strides = array<i32>} : memref<10x10x8xf32, #tpu.memory_space<vmem>>, vector<1x10x8xf32>,
    } else {
    }
    %c0_107 = arith.constant 0 : index
    %c0_108 = arith.constant 0 : index
    %c0_109 = arith.constant 0 : index
    %112 = vector.load %arg12[%c0_107, %c0_108, %c0_109] : memref<10x10x8xf32, #tpu.memory_space<vmem>>, vector<8x8x8xf32>
    %113 = vector.shape_cast %112 : vector<8x8x8xf32> to vector<64x8xf32>
    %114 = arith.truncf %113 : vector<64x8xf32> to vector<64x8xbf16>
    %c0_110 = arith.constant 0 : index
    %c0_111 = arith.constant 0 : index
    %c0_112 = arith.constant 0 : index
    %c0_113 = arith.constant 0 : index
    %115 = vector.load %arg7[%c0_110, %c0_111, %c0_112, %c0_113] : memref<3x3x8x8xbf16, #tpu.memory_space<vmem>>, vector<1x1x8x8xbf16>
    %116 = vector.shape_cast %115 : vector<1x1x8x8xbf16> to vector<8x8xbf16>
    %cst_114 = arith.constant dense<0.000000e+00> : vector<64x8xf32>
    %117 = tpu.matmul %114, %116, %cst_114 {dimension_numbers = #tpu.dot_dimension_numbers<[1], [0], [0], [1], [0, 0, 1, 1], [], []>} : vector<64x8xbf16>, vector<8x8xbf16>, vector<64x8xf32> -> vector<64x8xf32>
    %c0_115 = arith.constant 0 : index
    %c1_116 = arith.constant 1 : index
    %c0_117 = arith.constant 0 : index
    %118 = vector.load %arg12[%c0_115, %c1_116, %c0_117] : memref<10x10x8xf32, #tpu.memory_space<vmem>>, vector<8x8x8xf32>
    %119 = vector.shape_cast %118 : vector<8x8x8xf32> to vector<64x8xf32>
    %120 = arith.truncf %119 : vector<64x8xf32> to vector<64x8xbf16>
    %c0_118 = arith.constant 0 : index
    %c1_119 = arith.constant 1 : index
    %c0_120 = arith.constant 0 : index
    %c0_121 = arith.constant 0 : index
    %121 = vector.load %arg7[%c0_118, %c1_119, %c0_120, %c0_121] : memref<3x3x8x8xbf16, #tpu.memory_space<vmem>>, vector<1x1x8x8xbf16>
    %122 = vector.shape_cast %121 : vector<1x1x8x8xbf16> to vector<8x8xbf16>
    %cst_122 = arith.constant dense<0.000000e+00> : vector<64x8xf32>
    %123 = tpu.matmul %120, %122, %cst_122 {dimension_numbers = #tpu.dot_dimension_numbers<[1], [0], [0], [1], [0, 0, 1, 1], [], []>} : vector<64x8xbf16>, vector<8x8xbf16>, vector<64x8xf32> -> vector<64x8xf32>
    %124 = arith.addf %117, %123 : vector<64x8xf32>
    %c0_123 = arith.constant 0 : index
    %c2_124 = arith.constant 2 : index
    %c0_125 = arith.constant 0 : index
    %125 = vector.load %arg12[%c0_123, %c2_124, %c0_125] : memref<10x10x8xf32, #tpu.memory_space<vmem>>, vector<8x8x8xf32>
    %126 = vector.shape_cast %125 : vector<8x8x8xf32> to vector<64x8xf32>
    %127 = arith.truncf %126 : vector<64x8xf32> to vector<64x8xbf16>
    %c0_126 = arith.constant 0 : index
    %c2_127 = arith.constant 2 : index
    %c0_128 = arith.constant 0 : index
    %c0_129 = arith.constant 0 : index
    %128 = vector.load %arg7[%c0_126, %c2_127, %c0_128, %c0_129] : memref<3x3x8x8xbf16, #tpu.memory_space<vmem>>, vector<1x1x8x8xbf16>
    %129 = vector.shape_cast %128 : vector<1x1x8x8xbf16> to vector<8x8xbf16>
    %cst_130 = arith.constant dense<0.000000e+00> : vector<64x8xf32>
    %130 = tpu.matmul %127, %129, %cst_130 {dimension_numbers = #tpu.dot_dimension_numbers<[1], [0], [0], [1], [0, 0, 1, 1], [], []>} : vector<64x8xbf16>, vector<8x8xbf16>, vector<64x8xf32> -> vector<64x8xf32>
    %131 = arith.addf %124, %130 : vector<64x8xf32>
    %c1_131 = arith.constant 1 : index
    %c0_132 = arith.constant 0 : index
    %c0_133 = arith.constant 0 : index
    %132 = vector.load %arg12[%c1_131, %c0_132, %c0_133] : memref<10x10x8xf32, #tpu.memory_space<vmem>>, vector<8x8x8xf32>
    %133 = vector.shape_cast %132 : vector<8x8x8xf32> to vector<64x8xf32>
    %134 = arith.truncf %133 : vector<64x8xf32> to vector<64x8xbf16>
    %c1_134 = arith.constant 1 : index
    %c0_135 = arith.constant 0 : index
    %c0_136 = arith.constant 0 : index
    %c0_137 = arith.constant 0 : index
    %135 = vector.load %arg7[%c1_134, %c0_135, %c0_136, %c0_137] : memref<3x3x8x8xbf16, #tpu.memory_space<vmem>>, vector<1x1x8x8xbf16>
    %136 = vector.shape_cast %135 : vector<1x1x8x8xbf16> to vector<8x8xbf16>
    %cst_138 = arith.constant dense<0.000000e+00> : vector<64x8xf32>
    %137 = tpu.matmul %134, %136, %cst_138 {dimension_numbers = #tpu.dot_dimension_numbers<[1], [0], [0], [1], [0, 0, 1, 1], [], []>} : vector<64x8xbf16>, vector<8x8xbf16>, vector<64x8xf32> -> vector<64x8xf32>
    %138 = arith.addf %131, %137 : vector<64x8xf32>
    %c1_139 = arith.constant 1 : index
    %c1_140 = arith.constant 1 : index
    %c0_141 = arith.constant 0 : index
    %139 = vector.load %arg12[%c1_139, %c1_140, %c0_141] : memref<10x10x8xf32, #tpu.memory_space<vmem>>, vector<8x8x8xf32>
    %140 = vector.shape_cast %139 : vector<8x8x8xf32> to vector<64x8xf32>
    %141 = arith.truncf %140 : vector<64x8xf32> to vector<64x8xbf16>
    %c1_142 = arith.constant 1 : index
    %c1_143 = arith.constant 1 : index
    %c0_144 = arith.constant 0 : index
    %c0_145 = arith.constant 0 : index
    %142 = vector.load %arg7[%c1_142, %c1_143, %c0_144, %c0_145] : memref<3x3x8x8xbf16, #tpu.memory_space<vmem>>, vector<1x1x8x8xbf16>
    %143 = vector.shape_cast %142 : vector<1x1x8x8xbf16> to vector<8x8xbf16>
    %cst_146 = arith.constant dense<0.000000e+00> : vector<64x8xf32>
    %144 = tpu.matmul %141, %143, %cst_146 {dimension_numbers = #tpu.dot_dimension_numbers<[1], [0], [0], [1], [0, 0, 1, 1], [], []>} : vector<64x8xbf16>, vector<8x8xbf16>, vector<64x8xf32> -> vector<64x8xf32>
    %145 = arith.addf %138, %144 : vector<64x8xf32>
    %c1_147 = arith.constant 1 : index
    %c2_148 = arith.constant 2 : index
    %c0_149 = arith.constant 0 : index
    %146 = vector.load %arg12[%c1_147, %c2_148, %c0_149] : memref<10x10x8xf32, #tpu.memory_space<vmem>>, vector<8x8x8xf32>
    %147 = vector.shape_cast %146 : vector<8x8x8xf32> to vector<64x8xf32>
    %148 = arith.truncf %147 : vector<64x8xf32> to vector<64x8xbf16>
    %c1_150 = arith.constant 1 : index
    %c2_151 = arith.constant 2 : index
    %c0_152 = arith.constant 0 : index
    %c0_153 = arith.constant 0 : index
    %149 = vector.load %arg7[%c1_150, %c2_151, %c0_152, %c0_153] : memref<3x3x8x8xbf16, #tpu.memory_space<vmem>>, vector<1x1x8x8xbf16>
    %150 = vector.shape_cast %149 : vector<1x1x8x8xbf16> to vector<8x8xbf16>
    %cst_154 = arith.constant dense<0.000000e+00> : vector<64x8xf32>
    %151 = tpu.matmul %148, %150, %cst_154 {dimension_numbers = #tpu.dot_dimension_numbers<[1], [0], [0], [1], [0, 0, 1, 1], [], []>} : vector<64x8xbf16>, vector<8x8xbf16>, vector<64x8xf32> -> vector<64x8xf32>
    %152 = arith.addf %145, %151 : vector<64x8xf32>
    %c2_155 = arith.constant 2 : index
    %c0_156 = arith.constant 0 : index
    %c0_157 = arith.constant 0 : index
    %153 = vector.load %arg12[%c2_155, %c0_156, %c0_157] : memref<10x10x8xf32, #tpu.memory_space<vmem>>, vector<8x8x8xf32>
    %154 = vector.shape_cast %153 : vector<8x8x8xf32> to vector<64x8xf32>
    %155 = arith.truncf %154 : vector<64x8xf32> to vector<64x8xbf16>
    %c2_158 = arith.constant 2 : index
    %c0_159 = arith.constant 0 : index
    %c0_160 = arith.constant 0 : index
    %c0_161 = arith.constant 0 : index
    %156 = vector.load %arg7[%c2_158, %c0_159, %c0_160, %c0_161] : memref<3x3x8x8xbf16, #tpu.memory_space<vmem>>, vector<1x1x8x8xbf16>
    %157 = vector.shape_cast %156 : vector<1x1x8x8xbf16> to vector<8x8xbf16>
    %cst_162 = arith.constant dense<0.000000e+00> : vector<64x8xf32>
    %158 = tpu.matmul %155, %157, %cst_162 {dimension_numbers = #tpu.dot_dimension_numbers<[1], [0], [0], [1], [0, 0, 1, 1], [], []>} : vector<64x8xbf16>, vector<8x8xbf16>, vector<64x8xf32> -> vector<64x8xf32>
    %159 = arith.addf %152, %158 : vector<64x8xf32>
    %c2_163 = arith.constant 2 : index
    %c1_164 = arith.constant 1 : index
    %c0_165 = arith.constant 0 : index
    %160 = vector.load %arg12[%c2_163, %c1_164, %c0_165] : memref<10x10x8xf32, #tpu.memory_space<vmem>>, vector<8x8x8xf32>
    %161 = vector.shape_cast %160 : vector<8x8x8xf32> to vector<64x8xf32>
    %162 = arith.truncf %161 : vector<64x8xf32> to vector<64x8xbf16>
    %c2_166 = arith.constant 2 : index
    %c1_167 = arith.constant 1 : index
    %c0_168 = arith.constant 0 : index
    %c0_169 = arith.constant 0 : index
    %163 = vector.load %arg7[%c2_166, %c1_167, %c0_168, %c0_169] : memref<3x3x8x8xbf16, #tpu.memory_space<vmem>>, vector<1x1x8x8xbf16>
    %164 = vector.shape_cast %163 : vector<1x1x8x8xbf16> to vector<8x8xbf16>
    %cst_170 = arith.constant dense<0.000000e+00> : vector<64x8xf32>
    %165 = tpu.matmul %162, %164, %cst_170 {dimension_numbers = #tpu.dot_dimension_numbers<[1], [0], [0], [1], [0, 0, 1, 1], [], []>} : vector<64x8xbf16>, vector<8x8xbf16>, vector<64x8xf32> -> vector<64x8xf32>
    %166 = arith.addf %159, %165 : vector<64x8xf32>
    %c2_171 = arith.constant 2 : index
    %c2_172 = arith.constant 2 : index
    %c0_173 = arith.constant 0 : index
    %167 = vector.load %arg12[%c2_171, %c2_172, %c0_173] : memref<10x10x8xf32, #tpu.memory_space<vmem>>, vector<8x8x8xf32>
    %168 = vector.shape_cast %167 : vector<8x8x8xf32> to vector<64x8xf32>
    %169 = arith.truncf %168 : vector<64x8xf32> to vector<64x8xbf16>
    %c2_174 = arith.constant 2 : index
    %c2_175 = arith.constant 2 : index
    %c0_176 = arith.constant 0 : index
    %c0_177 = arith.constant 0 : index
    %170 = vector.load %arg7[%c2_174, %c2_175, %c0_176, %c0_177] : memref<3x3x8x8xbf16, #tpu.memory_space<vmem>>, vector<1x1x8x8xbf16>
    %171 = vector.shape_cast %170 : vector<1x1x8x8xbf16> to vector<8x8xbf16>
    %cst_178 = arith.constant dense<0.000000e+00> : vector<64x8xf32>
    %172 = tpu.matmul %169, %171, %cst_178 {dimension_numbers = #tpu.dot_dimension_numbers<[1], [0], [0], [1], [0, 0, 1, 1], [], []>} : vector<64x8xbf16>, vector<8x8xbf16>, vector<64x8xf32> -> vector<64x8xf32>
    %173 = arith.addf %166, %172 : vector<64x8xf32>
    %c0_179 = arith.constant 0 : index
    %c0_180 = arith.constant 0 : index
    %174 = vector.load %arg8[%c0_179, %c0_180] : memref<1x8xf32, #tpu.memory_space<vmem>>, vector<1x8xf32>
    %175 = vector.broadcast %174 : vector<1x8xf32> to vector<64x8xf32>
    %176 = arith.mulf %173, %175 : vector<64x8xf32>
    %c0_181 = arith.constant 0 : index
    %c0_182 = arith.constant 0 : index
    %177 = vector.load %arg9[%c0_181, %c0_182] : memref<1x8xf32, #tpu.memory_space<vmem>>, vector<1x8xf32>
    %178 = vector.broadcast %177 : vector<1x8xf32> to vector<64x8xf32>
    %179 = arith.addf %176, %178 : vector<64x8xf32>
    %cst_183 = arith.constant 0.000000e+00 : f32
    %180 = vector.broadcast %cst_183 : f32 to vector<64x8xf32>
    %181 = arith.maximumf %179, %180 : vector<64x8xf32>
    %c0_184 = arith.constant 0 : index
    %c0_185 = arith.constant 0 : index
    %c0_186 = arith.constant 0 : index
    %182 = vector.load %arg10[%c0_184, %c0_185, %c0_186] : memref<1x64x8xf32, #tpu.memory_space<vmem>>, vector<1x64x8xf32>
    %183 = vector.shape_cast %182 : vector<1x64x8xf32> to vector<64x8xf32>
    %184 = vector.shape_cast %181 : vector<64x8xf32> to vector<1x64x8xf32>
    tpu.vector_store %arg10[%c0_184, %c0_185, %c0_186], %184 {strides = array<i32>} : memref<1x64x8xf32, #tpu.memory_space<vmem>>, vector<1x64x8xf32>,
    return
  }
  func.func @transform_0(%arg0: i32, %arg1: i32) -> (i32, i32, i32, i32) {
    %c0_i32 = arith.constant 0 : i32
    %c0_i32_0 = arith.constant 0 : i32
    %c0_i32_1 = arith.constant 0 : i32
    return %arg0, %arg1, %c0_i32, %c0_i32_0 : i32, i32, i32, i32
  }
  func.func @transform_1(%arg0: i32, %arg1: i32) -> (i32, i32, i32, i32) {
    %c1_i32 = arith.constant 1 : i32
    %0 = arith.addi %arg1, %c1_i32 : i32
    %c2_i32 = arith.constant 2 : i32
    %1 = arith.muli %0, %c2_i32 : i32
    %c0_i32 = arith.constant 0 : i32
    %c0_i32_0 = arith.constant 0 : i32
    %c0_i32_1 = arith.constant 0 : i32
    return %arg0, %1, %c0_i32, %c0_i32_0 : i32, i32, i32, i32
  }
  func.func @transform_2(%arg0: i32, %arg1: i32) -> (i32, i32, i32, i32) {
    %c0_i32 = arith.constant 0 : i32
    %c0_i32_0 = arith.constant 0 : i32
    %c0_i32_1 = arith.constant 0 : i32
    %c0_i32_2 = arith.constant 0 : i32
    %c0_i32_3 = arith.constant 0 : i32
    return %c0_i32, %c0_i32_0, %c0_i32_1, %c0_i32_2 : i32, i32, i32, i32
  }
  func.func @transform_3(%arg0: i32, %arg1: i32) -> (i32, i32) {
    %c0_i32 = arith.constant 0 : i32
    %c0_i32_0 = arith.constant 0 : i32
    %c0_i32_1 = arith.constant 0 : i32
    return %c0_i32, %c0_i32_0 : i32, i32
  }
  func.func @transform_4(%arg0: i32, %arg1: i32) -> (i32, i32) {
    %c0_i32 = arith.constant 0 : i32
    %c0_i32_0 = arith.constant 0 : i32
    %c0_i32_1 = arith.constant 0 : i32
    return %c0_i32, %c0_i32_0 : i32, i32
  }
  func.func @transform_5(%arg0: i32, %arg1: i32) -> (i32, i32, i32, i32) {
    %c0_i32 = arith.constant 0 : i32
    %c0_i32_0 = arith.constant 0 : i32
    %c0_i32_1 = arith.constant 0 : i32
    %c0_i32_2 = arith.constant 0 : i32
    %c0_i32_3 = arith.constant 0 : i32
    return %c0_i32, %c0_i32_0, %c0_i32_1, %c0_i32_2 : i32, i32, i32, i32
  }
  func.func @transform_6(%arg0: i32, %arg1: i32) -> (i32, i32) {
    %c0_i32 = arith.constant 0 : i32
    %c0_i32_0 = arith.constant 0 : i32
    %c0_i32_1 = arith.constant 0 : i32
    return %c0_i32, %c0_i32_0 : i32, i32
  }
  func.func @transform_7(%arg0: i32, %arg1: i32) -> (i32, i32) {
    %c0_i32 = arith.constant 0 : i32
    %c0_i32_0 = arith.constant 0 : i32
    %c0_i32_1 = arith.constant 0 : i32
    return %c0_i32, %c0_i32_0 : i32, i32
  }
  func.func @transform_8(%arg0: i32, %arg1: i32) -> (i32, i32, i32) {
    %c0_i32 = arith.constant 0 : i32
    %c0_i32_0 = arith.constant 0 : i32
    return %arg0, %arg1, %c0_i32 : i32, i32, i32
  }
}

</mosaic_0001>

<bundles_post_ra>
// kernel: tpu_custom_call.1
= control target key start
LH: loop header
LB: loop body
LE: loop exit
PB: predicated region body
PF: predicated region fallthrough
CT: control target
= control target key end

     0   :  { %s3602_s27 = smov 0   ;;  %s3604_s28 = smov 0   ;;  %s4288_s0 = inlined_call_operand.vmem [shape: bf16[2,24,8,8], index: 0, kind: input, shape index: {}]   ;;  %s4289_s1 = inlined_call_operand.vmem [shape: bf16[2,24,8,8], index: 1, kind: input, shape index: {}]   ;;  %s4290_s2 = inlined_call_operand.vmem [shape: bf16[3,3,4,8], index: 2, kind: input, shape index: {}]   ;;  %s4291_s3 = inlined_call_operand.vmem [shape: f32[1,8], index: 3, kind: input, shape index: {}]   ;;  %s4292_s4 = inlined_call_operand.vmem [shape: f32[1,8], index: 4, kind: input, shape index: {}]   ;;  %s4293_s5 = inlined_call_operand.vmem [shape: bf16[3,3,8,8], index: 5, kind: input, shape index: {}]   ;;  %s4294_s6 = inlined_call_operand.vmem [shape: f32[1,8], index: 6, kind: input, shape index: {}]   ;;  %s4295_s7 = inlined_call_operand.vmem [shape: f32[1,8], index: 7, kind: input, shape index: {}]   ;;  %s4296_s8 = inlined_call_operand.vmem [shape: f32[2,64,8], index: 8, kind: output, shape index: {}]  }
   0x1   :  { %s3606_s29 = smov 0  }
   0x2 LB: > { %s30_s30 = sadd.s32 1, %s3548_s28  ;;  %p2752_p0 = scmp.ge.s32.totalorder %s3552_s29, 1  ;;  %s3552_s29 = sphi %s3606_s29, %s18_s29   ;;  %s3548_s28 = sphi %s3604_s28, %s4298_s28   ;;  %s3544_s27 = sphi %s3602_s27, %s4297_s27  }
   0x3   : > { %p32_p1 = scmp.ge.s32.totalorder %s30_s30, 2  ;;  %p316_p2 = scmp.lt.s32.totalorder %s3552_s29, 3 }
   0x5   : > { %s4300_s30 = smov (%p32_p1, %s30_s30), 0  ;;  %p317_p3 = pnand %p2752_p0, %p316_p2 }
   0x6   : > { %p378_p4 = scmp.lt.s32.totalorder (!%p317_p3), %s3544_s27, 1  ;;  %vm416_vm0 = vcmask (!%p317_p3), 24576   ;;  %v3554_v0 = vmov (!%p317_p3), 0.0   ;;  %s3555_s17 = smov (!%p317_p3), 124   ;;  %v2768_v44 = vld [vmem:[%s4290_s2 + $0x4] sm:$0x3] (!%p317_p3) }
   0x7   : > { %320 = sbr.rel (%p317_p3) target bundleno = 974 (0x3ce), region = 52  ;;  %3006 = vmatprep.subr.bf16.mxu0 (!%p317_p3), %v3554_v0  ;;  %2962 = vmatprep.subr.bf16.mxu1 (!%p317_p3), %v3554_v0  ;;  %429 = vst.msk [vmem:[#allocation2 + $0x9] sm:$0x1] (!%p317_p3), %vm416_vm0, %v3554_v0  ;;  %430 = vst.msk [vmem:[#allocation2 + $0x19] sm:$0x1] (!%p317_p3), %vm416_vm0, %v3554_v0  ;;  %vm632_vm1 = vcmask (!%p317_p3), 1041408  }
   0x8   : > { %417 = vst.msk [vmem:[#allocation2] sm:$0x1] (!%p317_p3), %vm416_vm0, %v3554_v0  ;;  %418 = vst.msk [vmem:[#allocation2 + $0x10] sm:$0x1] (!%p317_p3), %vm416_vm0, %v3554_v0  ;;  %v2757_v45 = vld [vmem:[%s4290_s2 + $0x2] sm:$0x3] (!%p317_p3) }
   0x9   : > { %419 = vst.msk [vmem:[#allocation2 + $0x20] sm:$0x1] (!%p317_p3), %vm416_vm0, %v3554_v0  ;;  %420 = vst.msk [vmem:[#allocation2 + $0x30] sm:$0x1] (!%p317_p3), %vm416_vm0, %v3554_v0  ;;  %v3730_v52 = vsel (!%p317_p3), %vm632_vm1, %v2768_v44, 0  ;;  %v634_v53 = vsel (!%p317_p3), %vm632_vm1, %v2757_v45, 0 }
   0xa   : > { %421 = vst.msk [vmem:[#allocation2 + $0x40] sm:$0x1] (!%p317_p3), %vm416_vm0, %v3554_v0  ;;  %422 = vst.msk [vmem:[#allocation2 + $0x50] sm:$0x1] (!%p317_p3), %vm416_vm0, %v3554_v0  ;;  %3007 = vmatpush3.bf16.msra.mxu0 (!%p317_p3), %v3730_v52  ;;  %2963 = vmatpush3.bf16.msra.mxu1 (!%p317_p3), %v634_v53  ;;  %vm3556_vm2 = vmmov (!%p317_p3), 0   ;;  %vm534_vm3 = vcmask (!%p317_p3), 31744  }
   0xb   : > { %423 = vst.msk [vmem:[#allocation2 + $0x60] sm:$0x1] (!%p317_p3), %vm416_vm0, %v3554_v0  ;;  %424 = vst.msk [vmem:[#allocation2 + $0x70] sm:$0x1] (!%p317_p3), %vm416_vm0, %v3554_v0  ;;  %2964 = vmatprep.mubr.msk.bf16.mxu1 (!%p317_p3), %vm3556_vm2, %v3554_v0  ;;  %3008 = vmatprep.mubr.msk.bf16.mxu0 (!%p317_p3), %vm3556_vm2, %v3554_v0  ;;  %vm441_vm4 = vcmask (!%p317_p3), 57344   ;;  %vm1732_vm5 = vcmask (!%p317_p3), 1043456  }
   0xc   : > { %425 = vst.msk [vmem:[#allocation2 + $0x80] sm:$0x1] (!%p317_p3), %vm416_vm0, %v3554_v0  ;;  %426 = vst.msk [vmem:[#allocation2 + $0x90] sm:$0x1] (!%p317_p3), %vm416_vm0, %v3554_v0  ;;  %3028 = vmatprep.subr.bf16.mxu0 (!%p317_p3), %v3554_v0  ;;  %2984 = vmatprep.subr.bf16.mxu1 (!%p317_p3), %v3554_v0  ;;  %vm1672_vm6 = vcmask (!%p317_p3), 64512   ;;  %vm1688_vm7 = vcmask (!%p317_p3), 58368  }
   0xd   : > { %427 = vst.msk [vmem:[#allocation2 + $0xa0] sm:$0x1] (!%p317_p3), %vm416_vm0, %v3554_v0  ;;  %428 = vst.msk [vmem:[#allocation2 + $0xb0] sm:$0x1] (!%p317_p3), %vm416_vm0, %v3554_v0 }
   0xe   : > { %s4302_s27 = smov (!%p378_p4, %s3544_s27), 1  ;;  %431 = vst.msk [vmem:[#allocation2 + $0x29] sm:$0x1] %vm416_vm0, %v3554_v0  ;;  %432 = vst.msk [vmem:[#allocation2 + $0x39] sm:$0x1] %vm416_vm0, %v3554_v0 }
   0xf   : > { %s3475_s9 = smul.u32 96, %s4302_s27  ;;  %433 = vst.msk [vmem:[#allocation2 + $0x49] sm:$0x1] %vm416_vm0, %v3554_v0  ;;  %434 = vst.msk [vmem:[#allocation2 + $0x59] sm:$0x1] %vm416_vm0, %v3554_v0  ;;  %s2862_s26 = sshll.u32 %s4302_s27, 6 }
  0x10   : > { %435 = vst.msk [vmem:[#allocation2 + $0x69] sm:$0x1] %vm416_vm0, %v3554_v0  ;;  %436 = vst.msk [vmem:[#allocation2 + $0x79] sm:$0x1] %vm416_vm0, %v3554_v0  ;;  %s4261_s11 = scalar_lea.vmem %s4296_s8, %s2862_s26 }
  0x11   : > { %s3626_s12 = scalar_lea.vmem %s4288_s0, %s3475_s9  ;;  %s3628_s13 = sadd.s32 64, %s3475_s9  ;;  %437 = vst.msk [vmem:[#allocation2 + $0x89] sm:$0x1] %vm416_vm0, %v3554_v0  ;;  %438 = vst.msk [vmem:[#allocation2 + $0x99] sm:$0x1] %vm416_vm0, %v3554_v0 }
  0x12   : > { %439 = vst.msk [vmem:[#allocation2 + $0xa9] sm:$0x1] %vm416_vm0, %v3554_v0  ;;  %440 = vst.msk [vmem:[#allocation2 + $0xb9] sm:$0x1] %vm416_vm0, %v3554_v0  ;;  %v462_v1 = vld [vmem:[%s3626_s12] sm:$0xf]  ;;  %s3693_s16 = scalar_lea.vmem %s4289_s1, %s3628_s13 }
  0x13   : > { %v463_v2 = vld [vmem:[%s3626_s12 + $0x4] sm:$0xf]  ;;  %v464_v3 = vld [vmem:[%s3626_s12 + $0x8] sm:$0xf]  ;;  %v465_v4 = vld [vmem:[%s3626_s12 + $0xc] sm:$0xf] }
  0x14   : > { %v478_v5 = vmax.bf16 %v463_v2, %v462_v1  ;;  %v466_v6 = vld [vmem:[%s3626_s12 + $0x10] sm:$0xf]  ;;  %v467_v7 = vld [vmem:[%s3626_s12 + $0x14] sm:$0xf]  ;;  %v479_v8 = vmax.bf16 %v465_v4, %v464_v3  ;;  %v468_v9 = vld [vmem:[%s3626_s12 + $0x18] sm:$0xf] }
  0x15   : > { %v469_v10 = vld [vmem:[%s3626_s12 + $0x1c] sm:$0xf]  ;;  %v470_v11 = vld [vmem:[%s3626_s12 + $0x20] sm:$0xf]  ;;  %v471_v13 = vld [vmem:[%s3626_s12 + $0x24] sm:$0xf]  ;;  %v480_v18 = vmax.bf16 %v467_v7, %v466_v6 }
  0x16   : > { %v3695_v12 = vunpack.c.l.bf16 %v478_v5  ;;  %v481_v14 = vmax.bf16 %v469_v10, %v468_v9  ;;  %v472_v15 = vld [vmem:[%s3626_s12 + $0x28] sm:$0xf]  ;;  %v473_v16 = vld [vmem:[%s3626_s12 + $0x2c] sm:$0xf]  ;;  %v487_v17 = vunpack.c.l.bf16 %v479_v8  ;;  %v482_v19 = vmax.bf16 %v471_v13, %v470_v11  ;;  %v474_v20 = vld [vmem:[%s3626_s12 + $0x30] sm:$0xf] }
  0x17   : > { %v475_v21 = vld [vmem:[%s3626_s12 + $0x34] sm:$0xf]  ;;  %v483_v22 = vmax.bf16 %v473_v16, %v472_v15  ;;  %v476_v23 = vld [vmem:[%s3626_s12 + $0x38] sm:$0xf]  ;;  %v477_v26 = vld [vmem:[%s3626_s12 + $0x3c] sm:$0xf]  ;;  %v488_v40 = vunpack.c.l.bf16 %v480_v18 }
  0x18   : > { %v3703_v24 = vunpack.c.l.bf16 %v481_v14  ;;  %v484_v25 = vmax.bf16 %v475_v21, %v474_v20  ;;  %v543_v27 = vld [vmem:[%s3693_s16] sm:$0xf]  ;;  %v544_v28 = vld [vmem:[%s3693_s16 + $0x4] sm:$0xf]  ;;  %v3505_v29 = vpack.i.bf16 %v487_v17, %v3695_v12  ;;  %v490_v30 = vunpack.c.l.bf16 %v482_v19  ;;  %v545_v33 = vld [vmem:[%s3693_s16 + $0x8] sm:$0xf] }
  0x19   : > { %v3709_v31 = vunpack.c.l.bf16 %v483_v22  ;;  %v485_v32 = vmax.bf16 %v477_v26, %v476_v23  ;;  %v546_v34 = vld [vmem:[%s3693_s16 + $0xc] sm:$0xf]  ;;  %v547_v35 = vld [vmem:[%s3693_s16 + $0x10] sm:$0xf]  ;;  %v551_v37 = vmax.bf16 %v544_v28, %v543_v27  ;;  %v548_v38 = vld [vmem:[%s3693_s16 + $0x14] sm:$0xf] }
  0x1a   : > { %v492_v36 = vunpack.c.l.bf16 %v484_v25  ;;  %v552_v39 = vmax.bf16 %v546_v34, %v545_v33  ;;  %3506 = vrot.lane.b32.xlu0 %v3505_v29, %s3555_s17  ;;  %v3510_v41 = vpack.i.bf16 %v490_v30, %v3703_v24  ;;  %v553_v43 = vmax.bf16 %v548_v38, %v547_v35  ;;  %v549_v48 = vld [vmem:[%s3693_s16 + $0x18] sm:$0xf]  ;;  %v550_v49 = vld [vmem:[%s3693_s16 + $0x1c] sm:$0xf]  ;;  %v2774_v16 = vld [vmem:[%s4290_s2 + $0x6] sm:$0x3] }
  0x1b   : > { %v493_v42 = vunpack.c.l.bf16 %v485_v32  ;;  %v555_v47 = vunpack.c.l.bf16 %v551_v37  ;;  %v554_v55 = vmax.bf16 %v550_v49, %v549_v48  ;;  %v599_v21 = vld [vmem:[%s4290_s2] sm:$0x3]  ;;  %v952_v32 = vsel %vm632_vm1, %v2774_v16, 0  ;;  %v2780_v38 = vld [vmem:[%s4290_s2 + $0x8] sm:$0x3] }
  0x1c   : > { %v3515_v46 = vpack.i.bf16 %v492_v36, %v3709_v31  ;;  %3511 = vrot.lane.b32.xlu1 %v3510_v41, %s3555_s17  ;;  %v3727_v50 = vunpack.c.l.bf16 %v552_v39  ;;  %v557_v51 = vunpack.c.l.bf16 %v553_v43  ;;  %v725_v33 = vsel %vm632_vm1, %v599_v21, 0  ;;  %442 = vst.msk [vmem:[#allocation3] sm:$0x1] %vm441_vm4, %v3554_v0  ;;  %452 = vst.msk [vmem:[#allocation3 + $0x9] sm:$0x1] %vm441_vm4, %v3554_v0 }
  0x1d   : > { %v3520_v54 = vpack.i.bf16 %v555_v47, %v493_v42  ;;  %v558_v57 = vunpack.c.l.bf16 %v554_v55  ;;  %v1070_v43 = vsel %vm632_vm1, %v2780_v38, 0  ;;  %443 = vst.msk [vmem:[#allocation3 + $0x10] sm:$0x1] %vm441_vm4, %v3554_v0  ;;  %444 = vst.msk [vmem:[#allocation3 + $0x20] sm:$0x1] %vm441_vm4, %v3554_v0 }
  0x1e   : > { %506 = vrot.lane.b32.xlu0 %v488_v40, %s3555_s17  ;;  %v3525_v56 = vpack.i.bf16 %v557_v51, %v3727_v50  ;;  %445 = vst.msk [vmem:[#allocation3 + $0x30] sm:$0x1] %vm441_vm4, %v3554_v0  ;;  %446 = vst.msk [vmem:[#allocation3 + $0x40] sm:$0x1] %vm441_vm4, %v3554_v0 }
  0x1f   : > { %447 = vst.msk [vmem:[#allocation3 + $0x50] sm:$0x1] %vm441_vm4, %v3554_v0  ;;  %448 = vst.msk [vmem:[#allocation3 + $0x60] sm:$0x1] %vm441_vm4, %v3554_v0 }
  0x20   : > { %3516 = vrot.lane.b32.xlu1 %v3515_v46, %s3555_s17  ;;  %449 = vst.msk [vmem:[#allocation3 + $0x70] sm:$0x1] %vm441_vm4, %v3554_v0  ;;  %450 = vst.msk [vmem:[#allocation3 + $0x80] sm:$0x1] %vm441_vm4, %v3554_v0 }
  0x21   : > { %451 = vst.msk [vmem:[#allocation3 + $0x90] sm:$0x1] %vm441_vm4, %v3554_v0  ;;  %453 = vst.msk [vmem:[#allocation3 + $0x19] sm:$0x1] %vm441_vm4, %v3554_v0 }
  0x22   : > { %3521 = vrot.lane.b32.xlu0 %v3520_v54, %s3555_s17  ;;  %454 = vst.msk [vmem:[#allocation3 + $0x29] sm:$0x1] %vm441_vm4, %v3554_v0  ;;  %455 = vst.msk [vmem:[#allocation3 + $0x39] sm:$0x1] %vm441_vm4, %v3554_v0 }
  0x23   : > { %456 = vst.msk [vmem:[#allocation3 + $0x49] sm:$0x1] %vm441_vm4, %v3554_v0  ;;  %457 = vst.msk [vmem:[#allocation3 + $0x59] sm:$0x1] %vm441_vm4, %v3554_v0 }
  0x24   : > { %3526 = vrot.lane.b32.xlu1 %v3525_v56, %s3555_s17  ;;  %458 = vst.msk [vmem:[#allocation3 + $0x69] sm:$0x1] %vm441_vm4, %v3554_v0  ;;  %459 = vst.msk [vmem:[#allocation3 + $0x79] sm:$0x1] %vm441_vm4, %v3554_v0 }
  0x25   : > { %460 = vst.msk [vmem:[#allocation3 + $0x89] sm:$0x1] %vm441_vm4, %v3554_v0  ;;  %461 = vst.msk [vmem:[#allocation3 + $0x99] sm:$0x1] %vm441_vm4, %v3554_v0 }
  0x26   : > { %569 = vrot.lane.b32.xlu0 %v558_v57, %s3555_s17 }
  0x8c   : > { %v3507_v58 = vpop.permute.xlu0 %3506 }
  0x8d   : > { %v3509_v59 = vunpack.i.h.bf16 %v3507_v58  ;;  %v3508_v60 = vunpack.i.l.bf16 %v3507_v58 }
  0x8e   : > { %v3512_v61 = vpop.permute.xlu1 %3511 }
  0x8f   : > { %v527_v62 = vmax.f32 %v487_v17, %v3509_v59  ;;  %v526_v63 = vmax.f32 %v3695_v12, %v3508_v60  ;;  %v3514_v1 = vunpack.i.h.bf16 %v3512_v61  ;;  %v3513_v2 = vunpack.i.l.bf16 %v3512_v61 }
  0x90   : > { %v507_v3 = vpop.permute.xlu0 %506 }
  0x91   : > { %536 = vst.msk [vmem:[#allocation2 + $0x11] sm:$0xff] %vm534_vm3, %v527_v62  ;;  %535 = vst.msk [vmem:[#allocation2 + $0x1] sm:$0xff] %vm534_vm3, %v526_v63  ;;  %v528_v4 = vmax.f32 %v488_v40, %v507_v3  ;;  %v530_v5 = vmax.f32 %v490_v30, %v3514_v1  ;;  %v529_v6 = vmax.f32 %v3703_v24, %v3513_v2 }
  0x92   : > { %v3517_v7 = vpop.permute.xlu1 %3516 }
  0x93   : > { %537 = vst.msk [vmem:[#allocation2 + $0x21] sm:$0xff] %vm534_vm3, %v528_v4  ;;  %539 = vst.msk [vmem:[#allocation2 + $0x41] sm:$0xff] %vm534_vm3, %v530_v5  ;;  %v3519_v8 = vunpack.i.h.bf16 %v3517_v7  ;;  %v3518_v9 = vunpack.i.l.bf16 %v3517_v7  ;;  %v2786_v4 = vld [vmem:[%s4290_s2 + $0xa] sm:$0x3] }
  0x94   : > { %538 = vst.msk [vmem:[#allocation2 + $0x31] sm:$0xff] %vm534_vm3, %v529_v6  ;;  %v3522_v10 = vpop.permute.xlu0 %3521  ;;  %v1188_v5 = vsel %vm632_vm1, %v2786_v4, 0  ;;  %v4060_v4 = vld [vmem:[%s4293_s5] sm:$0xf] }
  0x95   : > { %v532_v11 = vmax.f32 %v492_v36, %v3519_v8  ;;  %v531_v12 = vmax.f32 %v3709_v31, %v3518_v9  ;;  %v3524_v13 = vunpack.i.h.bf16 %v3522_v10  ;;  %v3523_v14 = vunpack.i.l.bf16 %v3522_v10 }
  0x96   : > { %v3527_v15 = vpop.permute.xlu1 %3526 }
  0x97   : > { %541 = vst.msk [vmem:[#allocation2 + $0x61] sm:$0xff] %vm534_vm3, %v532_v11  ;;  %540 = vst.msk [vmem:[#allocation2 + $0x51] sm:$0xff] %vm534_vm3, %v531_v12  ;;  %v575_v17 = vmax.f32 %v555_v47, %v3524_v13  ;;  %v533_v18 = vmax.f32 %v493_v42, %v3523_v14  ;;  %v3529_v19 = vunpack.i.h.bf16 %v3527_v15  ;;  %v3528_v20 = vunpack.i.l.bf16 %v3527_v15 }
  0x98   : > { %v600_v22 = vld [vmem:[#allocation2 + $0x1] sm:$0xff]  ;;  %v3762_v23 = vld [vmem:[#allocation2 + $0x11] sm:$0xff]  ;;  %v570_v25 = vpop.permute.xlu0 %569 }
  0x99   : > { %v800_v24 = vld [vmem:[#allocation2 + $0x2] sm:$0xff]  ;;  %v610_v26 = vpack.c.bf16 %v3762_v23, %v600_v22  ;;  %v3765_v27 = vld [vmem:[#allocation2 + $0x12] sm:$0xff]  ;;  %580 = vst.msk [vmem:[#allocation2 + $0x81] sm:$0xff] %vm534_vm3, %v575_v17  ;;  %542 = vst.msk [vmem:[#allocation2 + $0x71] sm:$0xff] %vm534_vm3, %v533_v18  ;;  %v577_v28 = vmax.f32 %v557_v51, %v3529_v19  ;;  %v576_v29 = vmax.f32 %v3727_v50, %v3528_v20 }
  0x9a   : > { %v578_v30 = vmax.f32 %v558_v57, %v570_v25  ;;  %v810_v31 = vpack.c.bf16 %v3765_v27, %v800_v24  ;;  %v3784_v35 = vld [vmem:[#allocation2 + $0x21] sm:$0xff]  ;;  %v919_v41 = vld [vmem:[#allocation2 + $0x10] sm:$0xff]  ;;  %v2792_v20 = vld [vmem:[%s4290_s2 + $0xc] sm:$0x3] }
  0x9b   : > { %2965 = vmatmul.mubr.msk.bf16.vlgmr.msra.gmra.mrb[0].mxu1 %vm534_vm3, %v610_v26  ;;  %582 = vst.msk [vmem:[#allocation2 + $0xa1] sm:$0xff] %vm534_vm3, %v577_v28  ;;  %581 = vst.msk [vmem:[#allocation2 + $0x91] sm:$0xff] %vm534_vm3, %v576_v29  ;;  %v3780_v34 = vld [vmem:[#allocation2 + $0x31] sm:$0xff]  ;;  %v920_v37 = vld [vmem:[#allocation2 + $0x20] sm:$0xff]  ;;  %v1307_v22 = vsel %vm632_vm1, %v2792_v20, 0 }
  0x9c   : > { %583 = vst.msk [vmem:[#allocation2 + $0xb1] sm:$0xff] %vm534_vm3, %v578_v30  ;;  %3009 = vmatmul.mubr.msk.bf16.vlgmr.msra.gmra.mrb[0].mxu0 %vm534_vm3, %v810_v31  ;;  %2968 = vmatprep.mubr.msk.bf16.mxu1 %vm3556_vm2, %v3554_v0  ;;  %v3789_v36 = vpack.c.bf16 %v3780_v34, %v3784_v35  ;;  %v604_v39 = vld [vmem:[#allocation2 + $0x41] sm:$0xff]  ;;  %v929_v42 = vpack.c.bf16 %v920_v37, %v919_v41  ;;  %v921_v46 = vld [vmem:[#allocation2 + $0x30] sm:$0xff] }
  0x9d   : > { %3029 = vmatpush3.bf16.msra.mxu0 %v952_v32  ;;  %3030 = vmatprep.mubr.msk.bf16.mxu0 %vm3556_vm2, %v3554_v0  ;;  %v922_v45 = vld [vmem:[#allocation2 + $0x40] sm:$0xff]  ;;  %v3842_v3 = vpack.c.bf16 %v921_v46, %v920_v37  ;;  %v1048_v7 = vpack.c.bf16 %v604_v39, %v3780_v34  ;;  %v803_v12 = vld [vmem:[#allocation2 + $0x32] sm:$0xff]  ;;  %v2798_v34 = vld [vmem:[%s4290_s2 + $0xe] sm:$0x3] }
  0x9e   : > { %3050 = vmatprep.subr.bf16.mxu0 %v3554_v0  ;;  %2985 = vmatpush3.bf16.msra.mxu1 %v725_v33  ;;  %v3799_v40 = vld [vmem:[#allocation2 + $0x51] sm:$0xff]  ;;  %v930_v47 = vpack.c.bf16 %v922_v45, %v921_v46  ;;  %v606_v48 = vld [vmem:[#allocation2 + $0x61] sm:$0xff] }
  0x9f   : > { %3250 = vmatprep.subr.bf16.mxu1 %v3554_v0  ;;  %v3803_v44 = vpack.c.bf16 %v3799_v40, %v604_v39  ;;  %v924_v51 = vld [vmem:[#allocation2 + $0x60] sm:$0xff]  ;;  %v923_v53 = vld [vmem:[#allocation2 + $0x50] sm:$0xff]  ;;  %v1049_v9 = vpack.c.bf16 %v606_v48, %v3799_v40 }
  0xa0   : > { %v607_v49 = vld [vmem:[#allocation2 + $0x71] sm:$0xff]  ;;  %v931_v54 = vpack.c.bf16 %v924_v51, %v923_v53  ;;  %v608_v55 = vld [vmem:[#allocation2 + $0x81] sm:$0xff]  ;;  %v3857_v6 = vpack.c.bf16 %v923_v53, %v922_v45 }
  0xa1   : > { %v3813_v50 = vpack.c.bf16 %v607_v49, %v606_v48  ;;  %v926_v58 = vld [vmem:[#allocation2 + $0x80] sm:$0xff]  ;;  %v925_v59 = vld [vmem:[#allocation2 + $0x70] sm:$0xff]  ;;  %v1050_v11 = vpack.c.bf16 %v608_v55, %v607_v49 }
  0xa2   : > { %v609_v56 = vld [vmem:[#allocation2 + $0x91] sm:$0xff]  ;;  %v932_v60 = vpack.c.bf16 %v926_v58, %v925_v59  ;;  %v584_v61 = vld [vmem:[#allocation2] sm:$0xff]  ;;  %v3868_v8 = vpack.c.bf16 %v925_v59, %v924_v51 }
  0xa3   : > { %2969 = vmatmul.mubr.msk.bf16.gmra.mrb[4].mxu1 %vm534_vm3, %v3789_v36  ;;  %v3822_v57 = vpack.c.bf16 %v609_v56, %v608_v55  ;;  %v594_v62 = vpack.c.bf16 %v919_v41, %v584_v61  ;;  %v3834_v63 = vld [vmem:[#allocation2 + $0xa0] sm:$0xff]  ;;  %v927_v1 = vld [vmem:[#allocation2 + $0x90] sm:$0xff] }
  0xa4   : > { %2972 = vmatprep.mubr.msk.bf16.mxu1 %vm3556_vm2, %v3554_v0  ;;  %v933_v2 = vpack.c.bf16 %v3834_v63, %v927_v1  ;;  %v598_v10 = vpack.c.bf16 %v927_v1, %v926_v58  ;;  %v802_v13 = vld [vmem:[#allocation2 + $0x22] sm:$0xff]  ;;  %v805_v18 = vld [vmem:[#allocation2 + $0x52] sm:$0xff]  ;;  %v2804_v39 = vld [vmem:[%s4290_s2 + $0x10] sm:$0x3] }
  0xa5   : > { %v3884_v14 = vpack.c.bf16 %v803_v12, %v802_v13  ;;  %v3890_v15 = vld [vmem:[#allocation2 + $0xa1] sm:$0xff]  ;;  %v1165_v21 = vpack.c.bf16 %v802_v13, %v3765_v27  ;;  %v807_v24 = vld [vmem:[#allocation2 + $0x72] sm:$0xff]  ;;  %v1543_v40 = vsel %vm632_vm1, %v2804_v39, 0 }
  0xa6   : > { %v1051_v16 = vpack.c.bf16 %v3890_v15, %v609_v56  ;;  %v804_v17 = vld [vmem:[#allocation2 + $0x42] sm:$0xff]  ;;  %v809_v28 = vld [vmem:[#allocation2 + $0x92] sm:$0xff] }
  0xa7   : > { %v3896_v19 = vpack.c.bf16 %v805_v18, %v804_v17  ;;  %v1166_v26 = vpack.c.bf16 %v804_v17, %v803_v12  ;;  %v808_v27 = vld [vmem:[#allocation2 + $0x82] sm:$0xff]  ;;  %v1283_v37 = vld [vmem:[#allocation2 + $0xb0] sm:$0xff] }
  0xa8   : > { %3031 = vmatmul.mubr.msk.bf16.vlgmr.msra.gmra.mrb[0].mxu0 %vm534_vm3, %v929_v42  ;;  %v3920_v29 = vpack.c.bf16 %v809_v28, %v808_v27  ;;  %v1168_v31 = vpack.c.bf16 %v808_v27, %v807_v24  ;;  %v3932_v32 = vld [vmem:[#allocation2 + $0xa2] sm:$0xff]  ;;  %v1288_v38 = vpack.c.bf16 %v1283_v37, %v3834_v63  ;;  %v1519_v42 = vld [vmem:[#allocation2 + $0xb2] sm:$0xff] }
  0xa9   : > { %3051 = vmatpush3.bf16.msra.mxu0 %v1070_v43  ;;  %3034 = vmatprep.mubr.msk.bf16.mxu0 %vm3556_vm2, %v3554_v0  ;;  %v1169_v33 = vpack.c.bf16 %v3932_v32, %v809_v28  ;;  %v1524_v43 = vpack.c.bf16 %v1519_v42, %v3932_v32  ;;  %v2812_v58 = vld [vmem:[%s4293_s5 + $0x4] sm:$0xf] }
  0xaa   : > { %3072 = vmatprep.subr.bf16.mxu0 %v3554_v0 }
  0xab   : > { %2973 = vmatmul.mubr.msk.bf16.gmra.mrb[8].mxu1 %vm534_vm3, %v3803_v44 }
  0xac   : > { %2976 = vmatprep.mubr.msk.bf16.mxu1 %vm3556_vm2, %v3554_v0 }
  0xb0   : > { %3035 = vmatmul.mubr.msk.bf16.gmra.mrb[4].mxu0 %vm534_vm3, %v930_v47 }
  0xb1   : > { %3038 = vmatprep.mubr.msk.bf16.mxu0 %vm3556_vm2, %v3554_v0 }
  0xb3   : > { %2977 = vmatmul.mubr.msk.bf16.gmra.mrb[12].mxu1 %vm534_vm3, %v3813_v50 }
  0xb4   : > { %2980 = vmatprep.mubr.msk.bf16.mxu1 %vm3556_vm2, %v3554_v0 }
  0xb8   : > { %3039 = vmatmul.mubr.msk.bf16.gmra.mrb[8].mxu0 %vm534_vm3, %v931_v54 }
  0xb9   : > { %3042 = vmatprep.mubr.msk.bf16.mxu0 %vm3556_vm2, %v3554_v0 }
  0xbb   : > { %2981 = vmatmul.mubr.msk.bf16.gmra.mrb[16].mxu1 %vm534_vm3, %v3822_v57 }
  0xbc   : > { %2986 = vmatprep.mubr.msk.bf16.mxu1 %vm3556_vm2, %v3554_v0 }
  0xc0   : > { %3043 = vmatmul.mubr.msk.bf16.gmra.mrb[12].mxu0 %vm534_vm3, %v932_v60  ;;  %v1734_v60 = vsel %vm1732_vm5, %v2812_v58, 0 }
  0xc1   : > { %3046 = vmatprep.mubr.msk.bf16.mxu0 %vm3556_vm2, %v3554_v0 }
  0xc3   : > { %2987 = vmatmul.mubr.msk.bf16.vlgmr.msra.gmra.mrb[0].mxu1 %vm534_vm3, %v594_v62 }
  0xc4   : > { %2990 = vmatprep.mubr.msk.bf16.mxu1 %vm3556_vm2, %v3554_v0  ;;  %3251 = vmatpush3.bf16.msra.mxu1 %v3730_v52  ;;  %v1047_v52 = vpack.c.bf16 %v3784_v35, %v3762_v23  ;;  %v806_v23 = vld [vmem:[#allocation2 + $0x62] sm:$0xff]  ;;  %v1425_v35 = vsel %vm632_vm1, %v2798_v34, 0 }
  0xc5   : > { %v3910_v25 = vpack.c.bf16 %v807_v24, %v806_v23  ;;  %v1167_v30 = vpack.c.bf16 %v806_v23, %v805_v18  ;;  %3466 = vmatprep.subr.msk.bf16.mxu1 %vm1732_vm5, %v2812_v58  ;;  %v2821_v58 = vld [vmem:[%s4293_s5 + $0x8] sm:$0xf] }
  0xc8   : > { %3047 = vmatmul.mubr.msk.bf16.gmra.mrb[16].mxu0 %vm534_vm3, %v933_v2 }
  0xc9   : > { %3052 = vmatprep.mubr.msk.bf16.mxu0 %vm3556_vm2, %v3554_v0 }
  0xcb   : > { %2991 = vmatmul.mubr.msk.bf16.gmra.mrb[4].mxu1 %vm534_vm3, %v3842_v3 }
  0xcc   : > { %2994 = vmatprep.mubr.msk.bf16.mxu1 %vm3556_vm2, %v3554_v0 }
  0xd0   : > { %3053 = vmatmul.mubr.msk.bf16.vlgmr.msra.gmra.mrb[0].mxu0 %vm534_vm3, %v1047_v52 }
  0xd1   : > { %3073 = vmatpush3.bf16.msra.mxu0 %v1188_v5  ;;  %3056 = vmatprep.mubr.msk.bf16.mxu0 %vm3556_vm2, %v3554_v0  ;;  %v4067_v5 = vld [vmem:[%s4291_s3] ss:$0 sm:$0xff] }
  0xd2   : > { %3094 = vmatprep.subr.bf16.mxu0 %v3554_v0 }
  0xd3   : > { %2995 = vmatmul.mubr.msk.bf16.gmra.mrb[8].mxu1 %vm534_vm3, %v3857_v6 }
  0xd4   : > { %2998 = vmatprep.mubr.msk.bf16.mxu1 %vm3556_vm2, %v3554_v0 }
  0xd8   : > { %3057 = vmatmul.mubr.msk.bf16.gmra.mrb[4].mxu0 %vm534_vm3, %v1048_v7 }
  0xd9   : > { %3060 = vmatprep.mubr.msk.bf16.mxu0 %vm3556_vm2, %v3554_v0 }
  0xdb   : > { %2999 = vmatmul.mubr.msk.bf16.gmra.mrb[12].mxu1 %vm534_vm3, %v3868_v8 }
  0xdc   : > { %3002 = vmatprep.mubr.msk.bf16.mxu1 %vm3556_vm2, %v3554_v0 }
  0xe0   : > { %3061 = vmatmul.mubr.msk.bf16.gmra.mrb[8].mxu0 %vm534_vm3, %v1049_v9 }
  0xe1   : > { %3064 = vmatprep.mubr.msk.bf16.mxu0 %vm3556_vm2, %v3554_v0 }
  0xe3   : > { %3003 = vmatmul.mubr.msk.bf16.gmra.mrb[16].mxu1 %vm534_vm3, %v598_v10 }
  0xe4   : > { %3012 = vmatprep.mubr.msk.bf16.mxu1 %vm3556_vm2, %v3554_v0 }
  0xe8   : > { %3065 = vmatmul.mubr.msk.bf16.gmra.mrb[12].mxu0 %vm534_vm3, %v1050_v11 }
  0xe9   : > { %3068 = vmatprep.mubr.msk.bf16.mxu0 %vm3556_vm2, %v3554_v0 }
  0xeb   : > { %3013 = vmatmul.mubr.msk.bf16.vlgmr.msra.gmra.mrb[4].mxu1 %vm534_vm3, %v3884_v14 }
  0xec   : > { %3016 = vmatprep.mubr.msk.bf16.mxu1 %vm3556_vm2, %v3554_v0  ;;  %3161 = vmatpush3.bf16.msra.mxu1 %v1734_v60 }
  0xed   : > { %3467 = vmatprep.subr.msk.bf16.mxu1 %vm1732_vm5, %v4060_v4 }
  0xf0   : > { %3069 = vmatmul.mubr.msk.bf16.gmra.mrb[16].mxu0 %vm534_vm3, %v1051_v16 }
  0xf1   : > { %3074 = vmatprep.mubr.msk.bf16.mxu0 %vm3556_vm2, %v3554_v0 }
  0xf3   : > { %3017 = vmatmul.mubr.msk.bf16.gmra.mrb[8].mxu1 %vm534_vm3, %v3896_v19 }
  0xf4   : > { %3020 = vmatprep.mubr.msk.bf16.mxu1 %vm3556_vm2, %v3554_v0 }
  0xf8   : > { %3075 = vmatmul.mubr.msk.bf16.vlgmr.msra.gmra.mrb[0].mxu0 %vm534_vm3, %v1165_v21 }
  0xf9   : > { %3095 = vmatpush3.bf16.msra.mxu0 %v1307_v22  ;;  %3078 = vmatprep.mubr.msk.bf16.mxu0 %vm3556_vm2, %v3554_v0 }
  0xfa   : > { %3116 = vmatprep.subr.bf16.mxu0 %v3554_v0 }
  0xfb   : > { %3021 = vmatmul.mubr.msk.bf16.gmra.mrb[12].mxu1 %vm534_vm3, %v3910_v25 }
  0xfc   : > { %3024 = vmatprep.mubr.msk.bf16.mxu1 %vm3556_vm2, %v3554_v0 }
 0x100   : > { %3079 = vmatmul.mubr.msk.bf16.gmra.mrb[4].mxu0 %vm534_vm3, %v1166_v26 }
 0x101   : > { %3082 = vmatprep.mubr.msk.bf16.mxu0 %vm3556_vm2, %v3554_v0 }
 0x103   : > { %3025 = vmatmul.mubr.msk.bf16.gmra.mrb[16].mxu1 %vm534_vm3, %v3920_v29 }
 0x108   : > { %3083 = vmatmul.mubr.msk.bf16.gmra.mrb[8].mxu0 %vm534_vm3, %v1167_v30 }
 0x109   : > { %3086 = vmatprep.mubr.msk.bf16.mxu0 %vm3556_vm2, %v3554_v0 }
 0x110   : > { %3087 = vmatmul.mubr.msk.bf16.gmra.mrb[12].mxu0 %vm534_vm3, %v1168_v31 }
 0x111   : > { %3090 = vmatprep.mubr.msk.bf16.mxu0 %vm3556_vm2, %v3554_v0 }
 0x118   : > { %3091 = vmatmul.mubr.msk.bf16.gmra.mrb[16].mxu0 %vm534_vm3, %v1169_v33 }
 0x119   : > { %3096 = vmatprep.mubr.msk.bf16.mxu0 %vm3556_vm2, %v3554_v0 }
 0x120   : > { %3097 = vmatmul.mubr.msk.bf16.vlgmr.msra.gmra.mrb[0].mxu0 %vm534_vm3, %v3842_v3 }
 0x121   : > { %3117 = vmatpush3.bf16.msra.mxu0 %v1425_v35  ;;  %3100 = vmatprep.mubr.msk.bf16.mxu0 %vm3556_vm2, %v3554_v0 }
 0x122   : > { %3138 = vmatprep.subr.bf16.mxu0 %v3554_v0 }
 0x128   : > { %3101 = vmatmul.mubr.msk.bf16.gmra.mrb[4].mxu0 %vm534_vm3, %v3857_v6 }
 0x129   : > { %3104 = vmatprep.mubr.msk.bf16.mxu0 %vm3556_vm2, %v3554_v0 }
 0x130   : > { %3105 = vmatmul.mubr.msk.bf16.gmra.mrb[8].mxu0 %vm534_vm3, %v3868_v8  ;;  %v4072_v8 = vld [vmem:[%s4292_s4] ss:$0 sm:$0xff] }
 0x131   : > { %3108 = vmatprep.mubr.msk.bf16.mxu0 %vm3556_vm2, %v3554_v0 }
 0x138   : > { %3109 = vmatmul.mubr.msk.bf16.gmra.mrb[12].mxu0 %vm534_vm3, %v598_v10 }
 0x139   : > { %3112 = vmatprep.mubr.msk.bf16.mxu0 %vm3556_vm2, %v3554_v0 }
 0x140   : > { %3113 = vmatmul.mubr.msk.bf16.gmra.mrb[16].mxu0 %vm534_vm3, %v1288_v38 }
 0x141   : > { %3118 = vmatprep.mubr.msk.bf16.mxu0 %vm3556_vm2, %v3554_v0 }
 0x148   : > { %3119 = vmatmul.mubr.msk.bf16.vlgmr.msra.gmra.mrb[0].mxu0 %vm534_vm3, %v3789_v36  ;;  %v1401_v36 = vld [vmem:[#allocation2 + $0xb1] sm:$0xff] }
 0x149   : > { %3139 = vmatpush3.bf16.msra.mxu0 %v1543_v40  ;;  %3122 = vmatprep.mubr.msk.bf16.mxu0 %vm3556_vm2, %v3554_v0  ;;  %v1406_v41 = vpack.c.bf16 %v1401_v36, %v3890_v15 }
 0x150   : > { %3123 = vmatmul.mubr.msk.bf16.gmra.mrb[4].mxu0 %vm534_vm3, %v3803_v44 }
 0x151   : > { %3126 = vmatprep.mubr.msk.bf16.mxu0 %vm3556_vm2, %v3554_v0 }
 0x158   : > { %3127 = vmatmul.mubr.msk.bf16.gmra.mrb[8].mxu0 %vm534_vm3, %v3813_v50 }
 0x159   : > { %3130 = vmatprep.mubr.msk.bf16.mxu0 %vm3556_vm2, %v3554_v0 }
 0x160   : > { %3131 = vmatmul.mubr.msk.bf16.gmra.mrb[12].mxu0 %vm534_vm3, %v3822_v57 }
 0x161   : > { %3134 = vmatprep.mubr.msk.bf16.mxu0 %vm3556_vm2, %v3554_v0 }
 0x168   : > { %3135 = vmatmul.mubr.msk.bf16.gmra.mrb[16].mxu0 %vm534_vm3, %v1406_v41 }
 0x169   : > { %3140 = vmatprep.mubr.msk.bf16.mxu0 %vm3556_vm2, %v3554_v0 }
 0x170   : > { %3141 = vmatmul.mubr.msk.bf16.vlgmr.msra.gmra.mrb[0].mxu0 %vm534_vm3, %v3884_v14 }
 0x171   : > { %3144 = vmatprep.mubr.msk.bf16.mxu0 %vm3556_vm2, %v3554_v0 }
 0x178   : > { %3145 = vmatmul.mubr.msk.bf16.gmra.mrb[4].mxu0 %vm534_vm3, %v3896_v19 }
 0x179   : > { %3148 = vmatprep.mubr.msk.bf16.mxu0 %vm3556_vm2, %v3554_v0 }
 0x180   : > { %3149 = vmatmul.mubr.msk.bf16.gmra.mrb[8].mxu0 %vm534_vm3, %v3910_v25 }
 0x181   : > { %3152 = vmatprep.mubr.msk.bf16.mxu0 %vm3556_vm2, %v3554_v0 }
 0x188   : > { %3153 = vmatmul.mubr.msk.bf16.gmra.mrb[12].mxu0 %vm534_vm3, %v3920_v29 }
 0x189   : > { %3156 = vmatprep.mubr.msk.bf16.mxu0 %vm3556_vm2, %v3554_v0 }
 0x190   : > { %3157 = vmatmul.mubr.msk.bf16.gmra.mrb[16].mxu0 %vm534_vm3, %v1524_v43 }
 0x196   : > { %v761_v44 = vpop.f32.mrb[0].mxu1 }
 0x197   : > { %v2988_v45 = vpop.f32.mrb[1].mxu1 }
 0x198   : > { %v764_v46 = vpop.f32.mrb[2].mxu1 }
 0x199   : > { %v2989_v47 = vpop.f32.mrb[3].mxu1 }
 0x1be   : > { %v877_v48 = vpop.f32.mrb[4].mxu1 }
 0x1bf   : > { %v3014_v49 = vpop.f32.mrb[5].mxu1 }
 0x1c0   : > { %v880_v50 = vpop.f32.mrb[6].mxu1 }
 0x1c1   : > { %v3015_v51 = vpop.f32.mrb[7].mxu1 }
 0x1c6   : > { %v885_v53 = vpop.f32.mrb[8].mxu1 }
 0x1c7   : > { %v3018_v54 = vpop.f32.mrb[9].mxu1 }
 0x1c8   : > { %v888_v55 = vpop.f32.mrb[10].mxu1 }
 0x1c9   : > { %v3019_v56 = vpop.f32.mrb[11].mxu1 }
 0x1ce   : > { %v4044_v57 = vpop.f32.mrb[12].mxu1 }
 0x1cf   : > { %v3022_v59 = vpop.f32.mrb[13].mxu1 }
 0x1d0   : > { %v4051_v61 = vpop.f32.mrb[14].mxu1 }
 0x1d1   : > { %v3023_v62 = vpop.f32.mrb[15].mxu1 }
 0x1d6   : > { %v4053_v63 = vpop.f32.mrb[16].mxu1 }
 0x1d7   : > { %v3026_v1 = vpop.f32.mrb[17].mxu1 }
 0x1d8   : > { %v4055_v2 = vpop.f32.mrb[18].mxu1 }
 0x1d9   : > { %v3027_v3 = vpop.f32.mrb[19].mxu1 }
 0x243   : > { %v1579_v52 = vpop.f32.mrb[0].mxu0 }
 0x244   : > { %v3252_v6 = vadd.f32 %v1579_v52, %v761_v44  ;;  %v3142_v7 = vpop.f32.mrb[1].mxu0 }
 0x245   : > { %v1582_v9 = vpop.f32.mrb[2].mxu0 }
 0x246   : > { %v1635_v10 = vmul.f32 %v3252_v6, %v4067_v5  ;;  %v3253_v11 = vadd.f32 %v1582_v9, %v764_v46  ;;  %v3143_v12 = vpop.f32.mrb[3].mxu0 }
 0x248   : > { %v1652_v13 = vadd.f32 %v4072_v8, %v1635_v10  ;;  %v1636_v14 = vmul.f32 %v3253_v11, %v4067_v5 }
 0x24a   : > { %v1662_v15 = vmax.f32 %v1652_v13, 0.0  ;;  %v1653_v16 = vadd.f32 %v4072_v8, %v1636_v14 }
 0x24b   : > { %v1587_v17 = vpop.f32.mrb[4].mxu0 }
 0x24c   : > { %1673 = vst.msk [vmem:[#allocation3 + $0x1] sm:$0xff] %vm1672_vm6, %v1662_v15  ;;  %v1663_v18 = vmax.f32 %v1653_v16, 0.0  ;;  %v3254_v19 = vadd.f32 %v1587_v17, %v877_v48  ;;  %v3146_v20 = vpop.f32.mrb[5].mxu0 }
 0x24d   : > { %1687 = vst.msk [vmem:[#allocation3] sm:$0xff] %vm1672_vm6, %v3554_v0  ;;  %v1590_v21 = vpop.f32.mrb[6].mxu0 }
 0x24e   : > { %1689 = vst.msk [vmem:[#allocation3 + $0x8] sm:$0x3] %vm1688_vm7, %v3554_v0  ;;  %v1637_v22 = vmul.f32 %v3254_v19, %v4067_v5  ;;  %v3255_v23 = vadd.f32 %v1590_v21, %v880_v50  ;;  %v3147_v24 = vpop.f32.mrb[7].mxu0 }
 0x24f   : > { %1674 = vst.msk [vmem:[#allocation3 + $0x11] sm:$0xff] %vm1672_vm6, %v1663_v18 }
 0x250   : > { %v1654_v25 = vadd.f32 %v4072_v8, %v1637_v22  ;;  %v1638_v26 = vmul.f32 %v3255_v23, %v4067_v5 }
 0x252   : > { %v1664_v27 = vmax.f32 %v1654_v25, 0.0  ;;  %v1655_v28 = vadd.f32 %v4072_v8, %v1638_v26  ;;  %v1908_v26 = vsel %vm1732_vm5, %v2821_v58, 0 }
 0x253   : > { %v1595_v29 = vpop.f32.mrb[8].mxu0 }
 0x254   : > { %1675 = vst.msk [vmem:[#allocation3 + $0x21] sm:$0xff] %vm1672_vm6, %v1664_v27  ;;  %v1665_v30 = vmax.f32 %v1655_v28, 0.0  ;;  %v3256_v31 = vadd.f32 %v1595_v29, %v885_v53  ;;  %v3150_v32 = vpop.f32.mrb[9].mxu0  ;;  %v1693_v19 = vld [vmem:[#allocation3] sm:$0xff] }
 0x255   : > { %v1706_v33 = vld [vmem:[#allocation3 + $0x1] sm:$0xff]  ;;  %v1598_v34 = vpop.f32.mrb[10].mxu0 }
 0x256   : > { %v4089_v35 = vld [vmem:[#allocation3 + $0x11] sm:$0xff]  ;;  %1676 = vst.msk [vmem:[#allocation3 + $0x31] sm:$0xff] %vm1672_vm6, %v1665_v30  ;;  %v1639_v37 = vmul.f32 %v3256_v31, %v4067_v5  ;;  %v3257_v38 = vadd.f32 %v1598_v34, %v888_v55  ;;  %v3151_v39 = vpop.f32.mrb[11].mxu0  ;;  %v1881_v30 = vld [vmem:[#allocation3 + $0x2] sm:$0xff] }
 0x257   : > { %v1714_v40 = vpack.c.bf16 %v4089_v35, %v1706_v33  ;;  %v1882_v31 = vld [vmem:[#allocation3 + $0x12] sm:$0xff] }
 0x258   : > { %v1656_v36 = vadd.f32 %v4072_v8, %v1639_v37  ;;  %v1640_v41 = vmul.f32 %v3257_v38, %v4067_v5  ;;  %v1889_v34 = vpack.c.bf16 %v1882_v31, %v1881_v30 }
 0x259   : > { %3162 = vmatprep.mubr.msk.bf16.mxu1 %vm1672_vm6, %v1714_v40 }
 0x25a   : > { %v1666_v42 = vmax.f32 %v1656_v36, 0.0  ;;  %v1657_v43 = vadd.f32 %v4072_v8, %v1640_v41 }
 0x25b   : > { %v1603_v44 = vpop.f32.mrb[12].mxu0  ;;  %v4098_v45 = vld [vmem:[#allocation3 + $0x21] sm:$0xff] }
 0x25c   : > { %1677 = vst.msk [vmem:[#allocation3 + $0x41] sm:$0xff] %vm1672_vm6, %v1666_v42  ;;  %v1667_v46 = vmax.f32 %v1657_v43, 0.0  ;;  %v3258_v47 = vadd.f32 %v1603_v44, %v4044_v57  ;;  %v3154_v48 = vpop.f32.mrb[13].mxu0  ;;  %v2094_v49 = vpack.c.bf16 %v4098_v45, %v4089_v35  ;;  %v1814_v57 = vsel %vm1732_vm5, %v4060_v4, 0  ;;  %v1695_v24 = vld [vmem:[#allocation3 + $0x20] sm:$0xff] }
 0x25d   : > { %v1606_v50 = vpop.f32.mrb[14].mxu0  ;;  %v4104_v51 = vld [vmem:[#allocation3 + $0x31] sm:$0xff]  ;;  %v1883_v39 = vld [vmem:[#allocation3 + $0x22] sm:$0xff] }
 0x25e   : > { %1678 = vst.msk [vmem:[#allocation3 + $0x51] sm:$0xff] %vm1672_vm6, %v1667_v46  ;;  %v1641_v53 = vmul.f32 %v3258_v47, %v4067_v5  ;;  %v3259_v54 = vadd.f32 %v1606_v50, %v4051_v61  ;;  %v3155_v55 = vpop.f32.mrb[15].mxu0  ;;  %v4111_v56 = vpack.c.bf16 %v4104_v51, %v4098_v45  ;;  %v1696_v22 = vld [vmem:[#allocation3 + $0x30] sm:$0xff] }
 0x25f   : > { %v4161_v25 = vpack.c.bf16 %v1696_v22, %v1695_v24  ;;  %v1884_v37 = vld [vmem:[#allocation3 + $0x32] sm:$0xff] }
 0x260   : > { %v1658_v59 = vadd.f32 %v4072_v8, %v1641_v53  ;;  %v1642_v60 = vmul.f32 %v3259_v54, %v4067_v5  ;;  %3163 = vmatmul.mubr.msk.bf16.vlgmr.msra.gmra.mrb[20].mxu1 %vm1672_vm6, %v4111_v56  ;;  %v4176_v40 = vpack.c.bf16 %v1884_v37, %v1883_v39  ;;  %v2831_v43 = vld [vmem:[%s4293_s5 + $0x10] sm:$0xf]  ;;  %v2836_v55 = vld [vmem:[%s4293_s5 + $0x14] sm:$0xf] }
 0x261   : > { %3171 = vmatpush3.bf16.msra.mxu1 %v1814_v57  ;;  %v2113_v53 = vsel %vm1732_vm5, %v2831_v43, 0 }
 0x262   : > { %v1668_v61 = vmax.f32 %v1658_v59, 0.0  ;;  %v1659_v62 = vadd.f32 %v4072_v8, %v1642_v60  ;;  %3468 = vmatprep.subr.msk.bf16.mxu1 %vm1732_vm5, %v2821_v58  ;;  %v2215_v59 = vsel %vm1732_vm5, %v2836_v55, 0 }
 0x263   : > { %v1611_v1 = vpop.f32.mrb[16].mxu0  ;;  %v4124_v3 = vld [vmem:[#allocation3 + $0x41] sm:$0xff] }
 0x264   : > { %1679 = vst.msk [vmem:[#allocation3 + $0x61] sm:$0xff] %vm1672_vm6, %v1668_v61  ;;  %v1669_v4 = vmax.f32 %v1659_v62, 0.0  ;;  %v3260_v52 = vadd.f32 %v1611_v1, %v4053_v63  ;;  %v3158_v6 = vpop.f32.mrb[17].mxu0  ;;  %v2095_v7 = vpack.c.bf16 %v4124_v3, %v4104_v51  ;;  %v1697_v27 = vld [vmem:[#allocation3 + $0x40] sm:$0xff]  ;;  %v2841_v61 = vld [vmem:[%s4293_s5 + $0x18] sm:$0xf] }
 0x265   : > { %v1614_v9 = vpop.f32.mrb[18].mxu0  ;;  %v4130_v10 = vld [vmem:[#allocation3 + $0x51] sm:$0xff]  ;;  %v1885_v41 = vld [vmem:[#allocation3 + $0x42] sm:$0xff]  ;;  %v1993_v50 = vpack.c.bf16 %v1697_v27, %v1696_v22  ;;  %v2318_v1 = vsel %vm1732_vm5, %v2841_v61, 0  ;;  %v2846_v51 = vld [vmem:[%s4293_s5 + $0x1c] sm:$0xf] }
 0x266   : > { %1680 = vst.msk [vmem:[#allocation3 + $0x71] sm:$0xff] %vm1672_vm6, %v1669_v4  ;;  %v1643_v11 = vmul.f32 %v3260_v52, %v4067_v5  ;;  %v3261_v12 = vadd.f32 %v1614_v9, %v4055_v2  ;;  %v3159_v13 = vpop.f32.mrb[19].mxu0  ;;  %v4137_v14 = vpack.c.bf16 %v4130_v10, %v4124_v3  ;;  %v1694_v2 = vld [vmem:[#allocation3 + $0x10] sm:$0xff]  ;;  %v2197_v62 = vpack.c.bf16 %v1885_v41, %v1884_v37 }
 0x267   : > { %v1698_v23 = vld [vmem:[#allocation3 + $0x50] sm:$0xff]  ;;  %v1992_v48 = vpack.c.bf16 %v1695_v24, %v1694_v2  ;;  %v2420_v6 = vsel %vm1732_vm5, %v2846_v51, 0 }
 0x268   : > { %v1660_v63 = vadd.f32 %v4072_v8, %v1643_v11  ;;  %v1644_v15 = vmul.f32 %v3261_v12, %v4067_v5  ;;  %3166 = vmatprep.mubr.msk.bf16.mxu1 %vm1672_vm6, %v4137_v14  ;;  %v4164_v28 = vpack.c.bf16 %v1698_v23, %v1697_v27  ;;  %v1886_v38 = vld [vmem:[#allocation3 + $0x52] sm:$0xff] }
 0x269   : > { %v4179_v42 = vpack.c.bf16 %v1886_v38, %v1885_v41 }
 0x26a   : > { %v1670_v16 = vmax.f32 %v1660_v63, 0.0  ;;  %v1661_v17 = vadd.f32 %v4072_v8, %v1644_v15  ;;  %v1701_v8 = vpack.c.bf16 %v1694_v2, %v1693_v19 }
 0x26b   : > { %v4145_v20 = vld [vmem:[#allocation3 + $0x61] sm:$0xff] }
 0x26c   : > { %1681 = vst.msk [vmem:[#allocation3 + $0x81] sm:$0xff] %vm1672_vm6, %v1670_v16  ;;  %v1671_v18 = vmax.f32 %v1661_v17, 0.0  ;;  %v1699_v32 = vld [vmem:[#allocation3 + $0x60] sm:$0xff]  ;;  %v2096_v60 = vpack.c.bf16 %v4145_v20, %v4130_v10 }
 0x26d   : > { %v4147_v21 = vld [vmem:[#allocation3 + $0x71] sm:$0xff]  ;;  %v1887_v46 = vld [vmem:[#allocation3 + $0x62] sm:$0xff]  ;;  %v1994_v54 = vpack.c.bf16 %v1699_v32, %v1698_v23  ;;  %v2857_v16 = vld [vmem:[%s4295_s7] ss:$0 sm:$0xff] }
 0x26e   : > { %1682 = vst.msk [vmem:[#allocation3 + $0x91] sm:$0xff] %vm1672_vm6, %v1671_v18  ;;  %v4152_v5 = vpack.c.bf16 %v4147_v21, %v4145_v20  ;;  %v1700_v29 = vld [vmem:[#allocation3 + $0x70] sm:$0xff]  ;;  %v2198_v4 = vpack.c.bf16 %v1887_v46, %v1886_v38 }
 0x26f   : > { %1691 = vst.msk [vmem:[#allocation3 + $0x90] sm:$0xff] %vm1672_vm6, %v3554_v0  ;;  %v1704_v33 = vpack.c.bf16 %v1700_v29, %v1699_v32  ;;  %v1888_v44 = vld [vmem:[#allocation3 + $0x72] sm:$0xff] }
 0x270   : > { %1692 = vst.msk [vmem:[#allocation3 + $0x98] sm:$0x3] %vm1688_vm7, %v3554_v0  ;;  %3167 = vmatmul.mubr.msk.bf16.gmra.mrb[24].mxu1 %vm1672_vm6, %v4152_v5  ;;  %v2826_v0 = vld [vmem:[%s4293_s5 + $0xc] sm:$0xf]  ;;  %v1892_v47 = vpack.c.bf16 %v1888_v44, %v1887_v46 }
 0x271   : > { %3172 = vmatprep.mubr.msk.bf16.mxu1 %vm1672_vm6, %v1701_v8  ;;  %v2011_v36 = vsel %vm1732_vm5, %v2826_v0, 0 }
 0x273   : > { %v1991_v57 = vld [vmem:[#allocation3 + $0x80] sm:$0xff] }
 0x274   : > { %v1995_v58 = vpack.c.bf16 %v1991_v57, %v1700_v29  ;;  %v2093_v35 = vld [vmem:[#allocation3 + $0x81] sm:$0xff] }
 0x275   : > { %v2097_v45 = vpack.c.bf16 %v2093_v35, %v4147_v21  ;;  %v2195_v3 = vld [vmem:[#allocation3 + $0x82] sm:$0xff] }
 0x276   : > { %v2199_v52 = vpack.c.bf16 %v2195_v3, %v1888_v44  ;;  %v2298_v9 = vld [vmem:[#allocation3 + $0x90] sm:$0xff] }
 0x277   : > { %v2302_v10 = vpack.c.bf16 %v2298_v9, %v1991_v57  ;;  %v2400_v12 = vld [vmem:[#allocation3 + $0x91] sm:$0xff] }
 0x278   : > { %3173 = vmatmul.mubr.msk.bf16.vlgmr.msra.gmra.mrb[20].mxu1 %vm1672_vm6, %v4161_v25  ;;  %v2404_v13 = vpack.c.bf16 %v2400_v12, %v2093_v35 }
 0x279   : > { %3181 = vmatpush3.bf16.msra.mxu1 %v1908_v26  ;;  %3176 = vmatprep.mubr.msk.bf16.mxu1 %vm1672_vm6, %v4164_v28 }
 0x27a   : > { %3469 = vmatprep.subr.msk.bf16.mxu1 %vm1732_vm5, %v2826_v0 }
 0x280   : > { %3177 = vmatmul.mubr.msk.bf16.gmra.mrb[24].mxu1 %vm1672_vm6, %v1704_v33 }
 0x281   : > { %3182 = vmatprep.mubr.msk.bf16.mxu1 %vm1672_vm6, %v1889_v34 }
 0x288   : > { %3183 = vmatmul.mubr.msk.bf16.vlgmr.msra.gmra.mrb[20].mxu1 %vm1672_vm6, %v4176_v40 }
 0x289   : > { %3191 = vmatpush3.bf16.msra.mxu1 %v2011_v36  ;;  %3186 = vmatprep.mubr.msk.bf16.mxu1 %vm1672_vm6, %v4179_v42 }
 0x28a   : > { %3470 = vmatprep.subr.msk.bf16.mxu1 %vm1732_vm5, %v2831_v43 }
 0x290   : > { %3187 = vmatmul.mubr.msk.bf16.gmra.mrb[24].mxu1 %vm1672_vm6, %v1892_v47 }
 0x291   : > { %3192 = vmatprep.mubr.msk.bf16.mxu1 %vm1672_vm6, %v1992_v48 }
 0x298   : > { %3193 = vmatmul.mubr.msk.bf16.vlgmr.msra.gmra.mrb[20].mxu1 %vm1672_vm6, %v1993_v50 }
 0x299   : > { %3201 = vmatpush3.bf16.msra.mxu1 %v2113_v53  ;;  %3196 = vmatprep.mubr.msk.bf16.mxu1 %vm1672_vm6, %v1994_v54 }
 0x29a   : > { %3471 = vmatprep.subr.msk.bf16.mxu1 %vm1732_vm5, %v2836_v55 }
 0x2a0   : > { %3197 = vmatmul.mubr.msk.bf16.gmra.mrb[24].mxu1 %vm1672_vm6, %v1995_v58 }
 0x2a1   : > { %3202 = vmatprep.mubr.msk.bf16.mxu1 %vm1672_vm6, %v2094_v49  ;;  %v2196_v49 = vpack.c.bf16 %v1883_v39, %v1882_v31 }
 0x2a8   : > { %3203 = vmatmul.mubr.msk.bf16.vlgmr.msra.gmra.mrb[20].mxu1 %vm1672_vm6, %v2095_v7  ;;  %v2851_v7 = vld [vmem:[%s4293_s5 + $0x20] sm:$0xf] }
 0x2a9   : > { %3211 = vmatpush3.bf16.msra.mxu1 %v2215_v59  ;;  %3206 = vmatprep.mubr.msk.bf16.mxu1 %vm1672_vm6, %v2096_v60  ;;  %v2522_v11 = vsel %vm1732_vm5, %v2851_v7, 0 }
 0x2aa   : > { %3472 = vmatprep.subr.msk.bf16.mxu1 %vm1732_vm5, %v2841_v61 }
 0x2b0   : > { %3207 = vmatmul.mubr.msk.bf16.gmra.mrb[24].mxu1 %vm1672_vm6, %v2097_v45 }
 0x2b1   : > { %3212 = vmatprep.mubr.msk.bf16.mxu1 %vm1672_vm6, %v2196_v49 }
 0x2b8   : > { %3213 = vmatmul.mubr.msk.bf16.vlgmr.msra.gmra.mrb[20].mxu1 %vm1672_vm6, %v2197_v62 }
 0x2b9   : > { %3221 = vmatpush3.bf16.msra.mxu1 %v2318_v1  ;;  %3216 = vmatprep.mubr.msk.bf16.mxu1 %vm1672_vm6, %v2198_v4 }
 0x2ba   : > { %3473 = vmatprep.subr.msk.bf16.mxu1 %vm1732_vm5, %v2846_v51 }
 0x2c0   : > { %3217 = vmatmul.mubr.msk.bf16.gmra.mrb[24].mxu1 %vm1672_vm6, %v2199_v52 }
 0x2c1   : > { %3222 = vmatprep.mubr.msk.bf16.mxu1 %vm1672_vm6, %v4161_v25 }
 0x2c8   : > { %3223 = vmatmul.mubr.msk.bf16.vlgmr.msra.gmra.mrb[20].mxu1 %vm1672_vm6, %v4164_v28 }
 0x2c9   : > { %3231 = vmatpush3.bf16.msra.mxu1 %v2420_v6  ;;  %3226 = vmatprep.mubr.msk.bf16.mxu1 %vm1672_vm6, %v1704_v33 }
 0x2ca   : > { %3474 = vmatprep.subr.msk.bf16.mxu1 %vm1732_vm5, %v2851_v7 }
 0x2d0   : > { %3227 = vmatmul.mubr.msk.bf16.gmra.mrb[24].mxu1 %vm1672_vm6, %v2302_v10 }
 0x2d1   : > { %3232 = vmatprep.mubr.msk.bf16.mxu1 %vm1672_vm6, %v4111_v56  ;;  %v2502_v56 = vld [vmem:[#allocation3 + $0x92] sm:$0xff] }
 0x2d2   : > { %v2506_v63 = vpack.c.bf16 %v2502_v56, %v2195_v3 }
 0x2d8   : > { %3233 = vmatmul.mubr.msk.bf16.vlgmr.msra.gmra.mrb[20].mxu1 %vm1672_vm6, %v4137_v14  ;;  %v2856_v14 = vld [vmem:[%s4294_s6] ss:$0 sm:$0xff] }
 0x2d9   : > { %3241 = vmatpush3.bf16.msra.mxu1 %v2522_v11  ;;  %3236 = vmatprep.mubr.msk.bf16.mxu1 %vm1672_vm6, %v4152_v5 }
 0x2e0   : > { %3237 = vmatmul.mubr.msk.bf16.gmra.mrb[24].mxu1 %vm1672_vm6, %v2404_v13 }
 0x2e1   : > { %3242 = vmatprep.mubr.msk.bf16.mxu1 %vm1672_vm6, %v4176_v40 }
 0x2e8   : > { %3243 = vmatmul.mubr.msk.bf16.vlgmr.msra.gmra.mrb[20].mxu1 %vm1672_vm6, %v4179_v42 }
 0x2e9   : > { %3246 = vmatprep.mubr.msk.bf16.mxu1 %vm1672_vm6, %v1892_v47 }
 0x2f0   : > { %3247 = vmatmul.mubr.msk.bf16.gmra.mrb[24].mxu1 %vm1672_vm6, %v2506_v63 }
 0x3bb   : > { %v3244_v15 = vpop.f32.mrb[20].mxu1 }
 0x3bc   : > { %v2606_v17 = vmul.f32 %v3244_v15, %v2856_v14  ;;  %v2558_v18 = vpop.f32.mrb[21].mxu1 }
 0x3bd   : > { %v2604_v19 = vmul.f32 %v2856_v14, %v2558_v18  ;;  %v3245_v2 = vpop.f32.mrb[22].mxu1 }
 0x3be   : > { %v2621_v20 = vadd.f32 %v2857_v16, %v2606_v17  ;;  %v2607_v21 = vmul.f32 %v3245_v2, %v2856_v14  ;;  %v2561_v5 = vpop.f32.mrb[23].mxu1 }
 0x3bf   : > { %v2619_v8 = vadd.f32 %v2857_v16, %v2604_v19  ;;  %v2605_v22 = vmul.f32 %v2856_v14, %v2561_v5 }
 0x3c0   : > { %v2629_v23 = vmax.f32 %v2621_v20, 0.0  ;;  %v2622_v24 = vadd.f32 %v2857_v16, %v2607_v21 }
 0x3c1   : > { %v2627_v25 = vmax.f32 %v2619_v8, 0.0  ;;  %v2620_v26 = vadd.f32 %v2857_v16, %v2605_v22 }
 0x3c2   : > { %2637 = vst.msk [vmem:[%s4261_s11 + $0x10] sm:$0xff] %vm1672_vm6, %v2629_v23  ;;  %v2630_v27 = vmax.f32 %v2622_v24, 0.0 }
 0x3c3   : > { %2635 = vst.msk [vmem:[%s4261_s11] sm:$0xff] %vm1672_vm6, %v2627_v25  ;;  %v2628_v28 = vmax.f32 %v2620_v26, 0.0  ;;  %v3248_v0 = vpop.f32.mrb[24].mxu1 }
 0x3c4   : > { %2638 = vst.msk [vmem:[%s4261_s11 + $0x18] sm:$0xff] %vm1672_vm6, %v2630_v27  ;;  %v2610_v29 = vmul.f32 %v3248_v0, %v2856_v14  ;;  %v2574_v30 = vpop.f32.mrb[25].mxu1 }
 0x3c5   : > { %2636 = vst.msk [vmem:[%s4261_s11 + $0x8] sm:$0xff] %vm1672_vm6, %v2628_v28  ;;  %v2608_v31 = vmul.f32 %v2856_v14, %v2574_v30  ;;  %v3249_v32 = vpop.f32.mrb[26].mxu1 }
 0x3c6   : > { %v2625_v33 = vadd.f32 %v2857_v16, %v2610_v29  ;;  %v2611_v34 = vmul.f32 %v3249_v32, %v2856_v14  ;;  %v2577_v37 = vpop.f32.mrb[27].mxu1 }
 0x3c7   : > { %v2623_v38 = vadd.f32 %v2857_v16, %v2608_v31  ;;  %v2609_v39 = vmul.f32 %v2856_v14, %v2577_v37 }
 0x3c8   : > { %v2633_v40 = vmax.f32 %v2625_v33, 0.0  ;;  %v2626_v36 = vadd.f32 %v2857_v16, %v2611_v34 }
 0x3c9   : > { %v2631_v41 = vmax.f32 %v2623_v38, 0.0  ;;  %v2624_v42 = vadd.f32 %v2857_v16, %v2609_v39 }
 0x3ca   : > { %2641 = vst.msk [vmem:[%s4261_s11 + $0x30] sm:$0xff] %vm1672_vm6, %v2633_v40  ;;  %v2634_v43 = vmax.f32 %v2626_v36, 0.0 }
 0x3cb   : > { %2639 = vst.msk [vmem:[%s4261_s11 + $0x20] sm:$0xff] %vm1672_vm6, %v2631_v41  ;;  %v2632_v44 = vmax.f32 %v2624_v42, 0.0 }
 0x3cc   : > { %2642 = vst.msk [vmem:[%s4261_s11 + $0x38] sm:$0xff] %vm1672_vm6, %v2634_v43 }
 0x3cd   : > { %2640 = vst.msk [vmem:[%s4261_s11 + $0x28] sm:$0xff] %vm1672_vm6, %v2632_v44 }
 0x3ce PF: > { %s18_s29 = sadd.s32 1, %s3552_s29   ;;  %s4297_s27 = smov %s3548_s28 }
 0x3cf   : > { %p15_p5 = scmp.ge.s32.totalorder %s18_s29, 4   ;;  %s4298_s28 = smov %s4300_s30 }
 0x3d1   :  { %17 = sbr.rel (!%p15_p5) target bundleno = 2 (0x2), region = 111 }

</bundles_post_ra>
